<compile_context>
chip_gen: v5e
topology: v5e:2x2
jax: 0.10.0
libtpu: 0.0.40
codegen_flags: <defaults>
</compile_context>

<pallas_src>
import functools
import math

import jax
import jax.numpy as jnp
from jax.experimental import pallas as pl
from jax.experimental.pallas import tpu as pltpu


# ----------------------------------------------------------------------------
# Pallas kernels
# ----------------------------------------------------------------------------
def _gcn_layer1_kernel(a_ref, xw_ref, b1_ref, w2_ref, hw2_ref, acc_ref):
    """Pass 1: HW2 = relu(A_hat @ XW1 + b1) @ W2, tiled over (rows, K)."""
    k = pl.program_id(1)

    @pl.when(k == 0)
    def _():
        acc_ref[...] = jnp.zeros_like(acc_ref)

    # Pure MXU accumulate in the K loop (bf16 operands, f32 accumulation).
    acc_ref[...] += jnp.dot(a_ref[...], xw_ref[...],
                            preferred_element_type=jnp.float32)

    @pl.when(k == pl.num_programs(1) - 1)
    def _():
        # Epilogue only on the final K step: bias + ReLU + fused H @ W2.
        h = jnp.maximum(acc_ref[...] + b1_ref[...], 0.0)
        # TODO(synk): training-mode dropout (p=0.2) via pltpu.prng_* not emitted
        #             (forward here is inference; dropout is identity).
        hw2 = jnp.dot(h.astype(jnp.bfloat16), w2_ref[...],
                      preferred_element_type=jnp.float32)
        hw2_ref[...] = hw2.astype(hw2_ref.dtype)


def _gcn_layer2_kernel(a_ref, hw2_ref, b2_ref, z_ref, acc_ref):
    """Pass 2: Z = A_hat @ HW2 + b2, tiled over (rows, K)."""
    k = pl.program_id(1)

    @pl.when(k == 0)
    def _():
        acc_ref[...] = jnp.zeros_like(acc_ref)

    acc_ref[...] += jnp.dot(a_ref[...], hw2_ref[...],
                            preferred_element_type=jnp.float32)

    @pl.when(k == pl.num_programs(1) - 1)
    def _():
        z_ref[...] = (acc_ref[...] + b2_ref[...]).astype(z_ref.dtype)


# ----------------------------------------------------------------------------
# Wrapper: padding, bf16 casts, two gridded pallas_calls.
# ----------------------------------------------------------------------------
def _round_up(v, m):
    return (v + m - 1) // m * m


_COMPILER_PARAMS = pltpu.CompilerParams(
    dimension_semantics=("parallel", "arbitrary"),   # row tiles shard across TCs (v7x)
    vmem_limit_bytes=32 * 1024 * 1024,               # tile footprint ~1 MiB; big headroom
)


@functools.partial(jax.jit, static_argnames=("tile_m", "tile_k"))
def gcn_forward(a_hat, x, w1, b1, w2, b2, *, tile_m=256, tile_k=512):
    n = x.shape[0]
    hidden = w1.shape[1]
    out_c = w2.shape[1]

    f32, bf16 = jnp.float32, jnp.bfloat16

    c1 = _round_up(hidden, 128)                     # lane-dense hidden width
    c2 = _round_up(out_c, 128)                      # lane-dense output width
    n_pad = _round_up(n, math.lcm(tile_m, tile_k))  # rows/K padded to tile multiples

    # bf16 A_hat stream, zero-padded (padded rows/cols contribute nothing).
    a_pad = jnp.zeros((n_pad, n_pad), bf16).at[:n, :n].set(a_hat.astype(bf16))

    # Hoisted tiny dense matmul: XW1 computed once, padded lane-dense, bf16 stream.
    xw1 = jnp.dot(x.astype(f32), w1.astype(f32))
    xw1_pad = jnp.zeros((n_pad, c1), bf16).at[:n, :hidden].set(xw1.astype(bf16))

    b1_pad = jnp.zeros((1, c1), f32).at[0, :hidden].set(b1.reshape(-1).astype(f32))
    w2_pad = jnp.zeros((c1, c2), bf16).at[:hidden, :out_c].set(w2.astype(bf16))
    b2_pad = jnp.zeros((1, c2), f32).at[0, :out_c].set(b2.reshape(-1).astype(f32))

    grid = (n_pad // tile_m, n_pad // tile_k)

    # ---- pass 1: HW2 = relu(A_hat @ XW1 + b1) @ W2 ----
    hw2 = pl.pallas_call(
        _gcn_layer1_kernel,
        out_shape=jax.ShapeDtypeStruct((n_pad, c2), bf16),
        grid_spec=pltpu.PrefetchScalarGridSpec(
            num_scalar_prefetch=0,
            grid=grid,
            in_specs=[
                pl.BlockSpec((tile_m, tile_k), lambda i, k: (i, k)),   # A_hat row/K tile
                pl.BlockSpec((tile_k, c1), lambda i, k: (k, 0)),       # XW1 K slab
                pl.BlockSpec((1, c1), lambda i, k: (0, 0)),            # b1
                pl.BlockSpec((c1, c2), lambda i, k: (0, 0)),           # W2 (resident)
            ],
            out_specs=pl.BlockSpec((tile_m, c2), lambda i, k: (i, 0)),
            scratch_shapes=[pltpu.VMEM((tile_m, c1), f32)],
        ),
        compiler_params=_COMPILER_PARAMS,
    )(a_pad, xw1_pad, b1_pad, w2_pad)

    # ---- pass 2: Z = A_hat @ HW2 + b2 ----
    z_pad = pl.pallas_call(
        _gcn_layer2_kernel,
        out_shape=jax.ShapeDtypeStruct((n_pad, c2), f32),
        grid_spec=pltpu.PrefetchScalarGridSpec(
            num_scalar_prefetch=0,
            grid=grid,
            in_specs=[
                pl.BlockSpec((tile_m, tile_k), lambda i, k: (i, k)),   # A_hat row/K tile
                pl.BlockSpec((tile_k, c2), lambda i, k: (k, 0)),       # HW2 K slab
                pl.BlockSpec((1, c2), lambda i, k: (0, 0)),            # b2
            ],
            out_specs=pl.BlockSpec((tile_m, c2), lambda i, k: (i, 0)),
            scratch_shapes=[pltpu.VMEM((tile_m, c2), f32)],
        ),
        compiler_params=_COMPILER_PARAMS,
    )(a_pad, hw2, b2_pad)

    return z_pad[:n, :out_c]


# ----------------------------------------------------------------------------
# Glue: dense GCN-normalized adjacency (matches PyG gcn_norm, add_self_loops=True).
# ----------------------------------------------------------------------------
def build_normalized_adjacency(edge_index, num_nodes):
    # TODO(synk): for realistic graph sizes (E << N^2) replace the dense A_hat with
    #             a sparse CSR SpMM kernel (scalar-prefetch row offsets / col indices).
    src = edge_index[0]
    dst = edge_index[1]
    loop = jnp.arange(num_nodes, dtype=edge_index.dtype)
    src = jnp.concatenate([src, loop])
    dst = jnp.concatenate([dst, loop])
    deg = jnp.zeros((num_nodes,), jnp.float32).at[dst].add(1.0)
    deg_inv_sqrt = jnp.where(deg > 0, 1.0 / jnp.sqrt(deg), 0.0)
    norm = deg_inv_sqrt[src] * deg_inv_sqrt[dst]
    # message passing: out[dst] += norm * x[src]  ->  A_hat[dst, src] = norm
    return jnp.zeros((num_nodes, num_nodes), jnp.float32).at[dst, src].add(norm)


def linkpred_gnn_forward(x, edge_index, params):
    a_hat = build_normalized_adjacency(edge_index, x.shape[0])
    return gcn_forward(a_hat, x, params["w1"], params["b1"],
                       params["w2"], params["b2"])


# ----------------------------------------------------------------------------
# Pure-JAX (f32) reference.
# ----------------------------------------------------------------------------
def reference_forward(x, edge_index, params):
    a_hat = build_normalized_adjacency(edge_index, x.shape[0])
    h = jnp.maximum(a_hat @ (x @ params["w1"]) + params["b1"], 0.0)
    return a_hat @ (h @ params["w2"]) + params["b2"]


if __name__ == "__main__":
    # small shapes consistent with the module
    num_nodes = 16
    in_channels = 8
    hidden_channels = 32
    out_channels = 16

    key = jax.random.PRNGKey(0)
    k_x, k_w1, k_w2 = jax.random.split(key, 3)

    # deterministic node features
    x = jax.random.normal(k_x, (num_nodes, in_channels), jnp.float32)

    # deterministic small graph: bidirectional ring
    src = jnp.arange(num_nodes, dtype=jnp.int32)
    dst = (src + 1) % num_nodes
    edge_index = jnp.stack(
        [jnp.concatenate([src, dst]), jnp.concatenate([dst, src])], axis=0
    )  # (2, 2*num_nodes)

    # deterministic glorot-style params (GCNConv: weight [in, out], bias [out])
    def glorot(k, fan_in, fan_out):
        scale = jnp.sqrt(6.0 / (fan_in + fan_out))
        return jax.random.uniform(k, (fan_in, fan_out), jnp.float32, -scale, scale)

    params = {
        "w1": glorot(k_w1, in_channels, hidden_channels),
        "b1": jnp.zeros((1, hidden_channels), jnp.float32),
        "w2": glorot(k_w2, hidden_channels, out_channels),
        "b2": jnp.zeros((1, out_channels), jnp.float32),
    }

    z = linkpred_gnn_forward(x, edge_index, params)
    z = jax.block_until_ready(z)

    z_ref = reference_forward(x, edge_index, params)
    assert z.shape == (num_nodes, out_channels)
    # bf16 A_hat / operand streams loosen the tolerance vs the f32 reference.
    assert jnp.allclose(z, z_ref, atol=5e-2, rtol=5e-2), "mismatch vs reference"

    print("KERNEL_OK")
</pallas_src>

<mosaic_0001>
module attributes {stable_mosaic.version = 11 : i64} {
  func.func @_gcn_layer2_kernel(%arg0: i32, %arg1: i32, %arg2: memref<256x512xbf16, #tpu.memory_space<vmem>>, %arg3: memref<512x128xbf16, #tpu.memory_space<vmem>>, %arg4: memref<1x128xf32, #tpu.memory_space<vmem>>, %arg5: memref<256x128xf32, #tpu.memory_space<vmem>>, %arg6: memref<256x128xf32, #tpu.memory_space<vmem>>) attributes {dimension_semantics = [#tpu.dimension_semantics<parallel>, #tpu.dimension_semantics<arbitrary>], iteration_bounds = array<i64: 2, 1>, scalar_prefetch = 0 : i64, scratch_operands = 1 : i64, tpu.core_type = #tpu.core_type<tc>, window_params = [{transform_indices = @transform_0, window_bounds = array<i64: 256, 512>}, {transform_indices = @transform_1, window_bounds = array<i64: 512, 128>}, {pipeline_mode = #tpu.pipeline_mode<synchronous>, transform_indices = @transform_2, window_bounds = array<i64: 1, 128>}, {transform_indices = @transform_3, window_bounds = array<i64: 256, 128>}]} {
    %c0_i32 = arith.constant 0 : i32
    %0 = arith.cmpi eq, %arg1, %c0_i32 : i32
    %1 = arith.extui %0 : i1 to i32
    %c0_i32_0 = arith.constant 0 : i32
    %2 = arith.cmpi ne, %1, %c0_i32_0 : i32
    scf.if %2 {
      %cst_10 = arith.constant 0.000000e+00 : f32
      %12 = vector.broadcast %cst_10 : f32 to vector<256x128xf32>
      %c0_11 = arith.constant 0 : index
      %c0_12 = arith.constant 0 : index
      %13 = vector.load %arg6[%c0_11, %c0_12] : memref<256x128xf32, #tpu.memory_space<vmem>>, vector<256x128xf32>
      tpu.vector_store %arg6[%c0_11, %c0_12], %12 {strides = array<i32>} : memref<256x128xf32, #tpu.memory_space<vmem>>, vector<256x128xf32>,
    } else {
    }
    %c0 = arith.constant 0 : index
    %c0_1 = arith.constant 0 : index
    %3 = vector.load %arg6[%c0, %c0_1] : memref<256x128xf32, #tpu.memory_space<vmem>>, vector<256x128xf32>
    %c0_2 = arith.constant 0 : index
    %c0_3 = arith.constant 0 : index
    %4 = vector.load %arg2[%c0_2, %c0_3] : memref<256x512xbf16, #tpu.memory_space<vmem>>, vector<256x512xbf16>
    %c0_4 = arith.constant 0 : index
    %c0_5 = arith.constant 0 : index
    %5 = vector.load %arg3[%c0_4, %c0_5] : memref<512x128xbf16, #tpu.memory_space<vmem>>, vector<512x128xbf16>
    %cst = arith.constant dense<0.000000e+00> : vector<256x128xf32>
    %6 = tpu.matmul %4, %5, %cst {dimension_numbers = #tpu.dot_dimension_numbers<[1], [0], [0], [1], [0, 0, 1, 1], [], []>} : vector<256x512xbf16>, vector<512x128xbf16>, vector<256x128xf32> -> vector<256x128xf32>
    %7 = arith.addf %3, %6 : vector<256x128xf32>
    %c0_6 = arith.constant 0 : index
    %c0_7 = arith.constant 0 : index
    %8 = vector.load %arg6[%c0_6, %c0_7] : memref<256x128xf32, #tpu.memory_space<vmem>>, vector<256x128xf32>
    tpu.vector_store %arg6[%c0_6, %c0_7], %7 {strides = array<i32>} : memref<256x128xf32, #tpu.memory_space<vmem>>, vector<256x128xf32>,
    %c0_i32_8 = arith.constant 0 : i32
    %9 = arith.cmpi eq, %arg1, %c0_i32_8 : i32
    %10 = arith.extui %9 : i1 to i32
    %c0_i32_9 = arith.constant 0 : i32
    %11 = arith.cmpi ne, %10, %c0_i32_9 : i32
    scf.if %11 {
      %c0_10 = arith.constant 0 : index
      %c0_11 = arith.constant 0 : index
      %12 = vector.load %arg6[%c0_10, %c0_11] : memref<256x128xf32, #tpu.memory_space<vmem>>, vector<256x128xf32>
      %c0_12 = arith.constant 0 : index
      %c0_13 = arith.constant 0 : index
      %13 = vector.load %arg4[%c0_12, %c0_13] : memref<1x128xf32, #tpu.memory_space<vmem>>, vector<1x128xf32>
      %14 = vector.broadcast %13 : vector<1x128xf32> to vector<256x128xf32>
      %15 = arith.addf %12, %14 : vector<256x128xf32>
      %c0_14 = arith.constant 0 : index
      %c0_15 = arith.constant 0 : index
      %16 = vector.load %arg5[%c0_14, %c0_15] : memref<256x128xf32, #tpu.memory_space<vmem>>, vector<256x128xf32>
      tpu.vector_store %arg5[%c0_14, %c0_15], %15 {strides = array<i32>} : memref<256x128xf32, #tpu.memory_space<vmem>>, vector<256x128xf32>,
    } else {
    }
    return
  }
  func.func @transform_0(%arg0: i32, %arg1: i32) -> (i32, i32) {
    %c0_i32 = arith.constant 0 : i32
    return %arg0, %arg1 : i32, i32
  }
  func.func @transform_1(%arg0: i32, %arg1: i32) -> (i32, i32) {
    %c0_i32 = arith.constant 0 : i32
    %c0_i32_0 = arith.constant 0 : i32
    return %arg1, %c0_i32 : i32, i32
  }
  func.func @transform_2(%arg0: i32, %arg1: i32) -> (i32, i32) {
    %c0_i32 = arith.constant 0 : i32
    %c0_i32_0 = arith.constant 0 : i32
    %c0_i32_1 = arith.constant 0 : i32
    return %c0_i32, %c0_i32_0 : i32, i32
  }
  func.func @transform_3(%arg0: i32, %arg1: i32) -> (i32, i32) {
    %c0_i32 = arith.constant 0 : i32
    %c0_i32_0 = arith.constant 0 : i32
    return %arg0, %c0_i32 : i32, i32
  }
}

module attributes {stable_mosaic.version = 11 : i64} {
  func.func @_gcn_layer1_kernel(%arg0: i32, %arg1: i32, %arg2: memref<256x512xbf16, #tpu.memory_space<vmem>>, %arg3: memref<512x128xbf16, #tpu.memory_space<vmem>>, %arg4: memref<1x128xf32, #tpu.memory_space<vmem>>, %arg5: memref<128x128xbf16, #tpu.memory_space<vmem>>, %arg6: memref<256x128xbf16, #tpu.memory_space<vmem>>, %arg7: memref<256x128xf32, #tpu.memory_space<vmem>>) attributes {dimension_semantics = [#tpu.dimension_semantics<parallel>, #tpu.dimension_semantics<arbitrary>], iteration_bounds = array<i64: 2, 1>, scalar_prefetch = 0 : i64, scratch_operands = 1 : i64, tpu.core_type = #tpu.core_type<tc>, window_params = [{transform_indices = @transform_0, window_bounds = array<i64: 256, 512>}, {transform_indices = @transform_1, window_bounds = array<i64: 512, 128>}, {pipeline_mode = #tpu.pipeline_mode<synchronous>, transform_indices = @transform_2, window_bounds = array<i64: 1, 128>}, {pipeline_mode = #tpu.pipeline_mode<synchronous>, transform_indices = @transform_3, window_bounds = array<i64: 128, 128>}, {transform_indices = @transform_4, window_bounds = array<i64: 256, 128>}]} {
    %c0_i32 = arith.constant 0 : i32
    %0 = arith.cmpi eq, %arg1, %c0_i32 : i32
    %1 = arith.extui %0 : i1 to i32
    %c0_i32_0 = arith.constant 0 : i32
    %2 = arith.cmpi ne, %1, %c0_i32_0 : i32
    scf.if %2 {
      %cst_10 = arith.constant 0.000000e+00 : f32
      %12 = vector.broadcast %cst_10 : f32 to vector<256x128xf32>
      %c0_11 = arith.constant 0 : index
      %c0_12 = arith.constant 0 : index
      %13 = vector.load %arg7[%c0_11, %c0_12] : memref<256x128xf32, #tpu.memory_space<vmem>>, vector<256x128xf32>
      tpu.vector_store %arg7[%c0_11, %c0_12], %12 {strides = array<i32>} : memref<256x128xf32, #tpu.memory_space<vmem>>, vector<256x128xf32>,
    } else {
    }
    %c0 = arith.constant 0 : index
    %c0_1 = arith.constant 0 : index
    %3 = vector.load %arg7[%c0, %c0_1] : memref<256x128xf32, #tpu.memory_space<vmem>>, vector<256x128xf32>
    %c0_2 = arith.constant 0 : index
    %c0_3 = arith.constant 0 : index
    %4 = vector.load %arg2[%c0_2, %c0_3] : memref<256x512xbf16, #tpu.memory_space<vmem>>, vector<256x512xbf16>
    %c0_4 = arith.constant 0 : index
    %c0_5 = arith.constant 0 : index
    %5 = vector.load %arg3[%c0_4, %c0_5] : memref<512x128xbf16, #tpu.memory_space<vmem>>, vector<512x128xbf16>
    %cst = arith.constant dense<0.000000e+00> : vector<256x128xf32>
    %6 = tpu.matmul %4, %5, %cst {dimension_numbers = #tpu.dot_dimension_numbers<[1], [0], [0], [1], [0, 0, 1, 1], [], []>} : vector<256x512xbf16>, vector<512x128xbf16>, vector<256x128xf32> -> vector<256x128xf32>
    %7 = arith.addf %3, %6 : vector<256x128xf32>
    %c0_6 = arith.constant 0 : index
    %c0_7 = arith.constant 0 : index
    %8 = vector.load %arg7[%c0_6, %c0_7] : memref<256x128xf32, #tpu.memory_space<vmem>>, vector<256x128xf32>
    tpu.vector_store %arg7[%c0_6, %c0_7], %7 {strides = array<i32>} : memref<256x128xf32, #tpu.memory_space<vmem>>, vector<256x128xf32>,
    %c0_i32_8 = arith.constant 0 : i32
    %9 = arith.cmpi eq, %arg1, %c0_i32_8 : i32
    %10 = arith.extui %9 : i1 to i32
    %c0_i32_9 = arith.constant 0 : i32
    %11 = arith.cmpi ne, %10, %c0_i32_9 : i32
    scf.if %11 {
      %c0_10 = arith.constant 0 : index
      %c0_11 = arith.constant 0 : index
      %12 = vector.load %arg7[%c0_10, %c0_11] : memref<256x128xf32, #tpu.memory_space<vmem>>, vector<256x128xf32>
      %c0_12 = arith.constant 0 : index
      %c0_13 = arith.constant 0 : index
      %13 = vector.load %arg4[%c0_12, %c0_13] : memref<1x128xf32, #tpu.memory_space<vmem>>, vector<1x128xf32>
      %14 = vector.broadcast %13 : vector<1x128xf32> to vector<256x128xf32>
      %15 = arith.addf %12, %14 : vector<256x128xf32>
      %cst_14 = arith.constant 0.000000e+00 : f32
      %16 = vector.broadcast %cst_14 : f32 to vector<256x128xf32>
      %17 = arith.maximumf %15, %16 : vector<256x128xf32>
      %18 = arith.truncf %17 : vector<256x128xf32> to vector<256x128xbf16>
      %c0_15 = arith.constant 0 : index
      %c0_16 = arith.constant 0 : index
      %19 = vector.load %arg5[%c0_15, %c0_16] : memref<128x128xbf16, #tpu.memory_space<vmem>>, vector<128x128xbf16>
      %cst_17 = arith.constant dense<0.000000e+00> : vector<256x128xf32>
      %20 = tpu.matmul %18, %19, %cst_17 {dimension_numbers = #tpu.dot_dimension_numbers<[1], [0], [0], [1], [0, 0, 1, 1], [], []>} : vector<256x128xbf16>, vector<128x128xbf16>, vector<256x128xf32> -> vector<256x128xf32>
      %21 = arith.truncf %20 : vector<256x128xf32> to vector<256x128xbf16>
      %c0_18 = arith.constant 0 : index
      %c0_19 = arith.constant 0 : index
      %22 = vector.load %arg6[%c0_18, %c0_19] : memref<256x128xbf16, #tpu.memory_space<vmem>>, vector<256x128xbf16>
      tpu.vector_store %arg6[%c0_18, %c0_19], %21 {strides = array<i32>} : memref<256x128xbf16, #tpu.memory_space<vmem>>, vector<256x128xbf16>,
    } else {
    }
    return
  }
  func.func @transform_0(%arg0: i32, %arg1: i32) -> (i32, i32) {
    %c0_i32 = arith.constant 0 : i32
    return %arg0, %arg1 : i32, i32
  }
  func.func @transform_1(%arg0: i32, %arg1: i32) -> (i32, i32) {
    %c0_i32 = arith.constant 0 : i32
    %c0_i32_0 = arith.constant 0 : i32
    return %arg1, %c0_i32 : i32, i32
  }
  func.func @transform_2(%arg0: i32, %arg1: i32) -> (i32, i32) {
    %c0_i32 = arith.constant 0 : i32
    %c0_i32_0 = arith.constant 0 : i32
    %c0_i32_1 = arith.constant 0 : i32
    return %c0_i32, %c0_i32_0 : i32, i32
  }
  func.func @transform_3(%arg0: i32, %arg1: i32) -> (i32, i32) {
    %c0_i32 = arith.constant 0 : i32
    %c0_i32_0 = arith.constant 0 : i32
    %c0_i32_1 = arith.constant 0 : i32
    return %c0_i32, %c0_i32_0 : i32, i32
  }
  func.func @transform_4(%arg0: i32, %arg1: i32) -> (i32, i32) {
    %c0_i32 = arith.constant 0 : i32
    %c0_i32_0 = arith.constant 0 : i32
    return %arg0, %c0_i32 : i32, i32
  }
}

</mosaic_0001>

<bundles_post_ra>
// kernel: gcn_forward.3
= control target key start
LH: loop header
LB: loop body
LE: loop exit
PB: predicated region body
PF: predicated region fallthrough
CT: control target
= control target key end

     0   :  { %s2107_s12 = smov 0   ;;  %s2109_s13 = smov 0   ;;  %s2444_s0 = inlined_call_operand.vmem [shape: bf16[512,512], index: 0, kind: input, shape index: {}]   ;;  %s2445_s1 = inlined_call_operand.vmem [shape: bf16[512,128], index: 1, kind: input, shape index: {}]   ;;  %s2446_s2 = inlined_call_operand.vmem [shape: f32[1,128], index: 2, kind: input, shape index: {}]   ;;  %s2447_s3 = inlined_call_operand.vmem [shape: f32[512,128], index: 3, kind: output, shape index: {}]  }
   0x1   :  { %s2111_s14 = smov 0  }
   0x2 LB: > { %s25_s15 = sadd.s32 1, %s2081_s13  ;;  %p1549_p0 = scmp.ge.s32.totalorder %s2085_s14, 1  ;;  %s2085_s14 = sphi %s2111_s14, %s13_s14   ;;  %s2081_s13 = sphi %s2109_s13, %s2449_s13   ;;  %s2077_s12 = sphi %s2107_s12, %s2448_s12  }
   0x3   : > { %p27_p1 = scmp.ge.s32.totalorder %s25_s15, 2  ;;  %p169_p2 = scmp.lt.s32.totalorder %s2085_s14, 3 }
   0x5   : > { %s2451_s15 = smov (%p27_p1, %s25_s15), 0  ;;  %p170_p3 = pnand %p1549_p0, %p169_p2 }
   0x6   : > { %s1550_s17 = sshll.u32 (!%p170_p3), %s2077_s12, 5 }
   0x7   : > { %173 = sbr.rel (%p170_p3) target bundleno = 433 (0x1b1), region = 32  ;;  %p205_p4 = scmp.lt.s32.totalorder (!%p170_p3), %s1550_s17, 63 }
   0xc   : > { %v2013_v0 = vld [vmem:[%s2445_s1 + $0x38] sm:$0xff]  ;;  %v2012_v4 = vld [vmem:[%s2445_s1 + $0x30] sm:$0xff]  ;;  %v2011_v8 = vld [vmem:[%s2445_s1 + $0x28] sm:$0xff]  ;;  %s2453_s17 = smov (!%p205_p4, %s1550_s17), 63 }
   0xd   : > { %v2021_v1 = vld [vmem:[%s2445_s1 + $0x78] sm:$0xff]  ;;  %935 = vmatpush.bf16.msra.mxu0 %v2013_v0  ;;  %v2020_v5 = vld [vmem:[%s2445_s1 + $0x70] sm:$0xff]  ;;  %v2019_v9 = vld [vmem:[%s2445_s1 + $0x68] sm:$0xff]  ;;  %s1941_s19 = sshll.u32 %s2453_s17, 4  ;;  %s1554_s11 = sshll.u32 %s2453_s17, 3 }
   0xe   : > { %v2029_v2 = vld [vmem:[%s2445_s1 + $0xb8] sm:$0xff]  ;;  %1024 = vmatpush.bf16.msra.mxu1 %v2021_v1  ;;  %v2028_v6 = vld [vmem:[%s2445_s1 + $0xb0] sm:$0xff]  ;;  %v2027_v10 = vld [vmem:[%s2445_s1 + $0xa8] sm:$0xff]  ;;  %s2212_s12 = scalar_lea.vmem %s2444_s0, %s1941_s19  ;;  %s2313_s21 = scalar_lea.vmem %s2447_s3, %s1554_s11 }
   0xf   : > { %v2037_v3 = vld [vmem:[%s2445_s1 + $0xf8] sm:$0xff]  ;;  %1113 = vmatpush.bf16.msra.mxu2 %v2029_v2  ;;  %v2036_v7 = vld [vmem:[%s2445_s1 + $0xf0] sm:$0xff]  ;;  %v2035_v11 = vld [vmem:[%s2445_s1 + $0xe8] sm:$0xff] }
  0x10   : > { %1202 = vmatpush.bf16.msra.mxu3 %v2037_v3  ;;  %v2010_v12 = vld [vmem:[%s2445_s1 + $0x20] sm:$0xff]  ;;  %v2009_v16 = vld [vmem:[%s2445_s1 + $0x18] sm:$0xff]  ;;  %v2008_v20 = vld [vmem:[%s2445_s1 + $0x10] sm:$0xff] }
  0x11   : > { %936 = vmatpush.bf16.msra.mxu0 %v2012_v4  ;;  %v2018_v13 = vld [vmem:[%s2445_s1 + $0x60] sm:$0xff]  ;;  %v2017_v17 = vld [vmem:[%s2445_s1 + $0x58] sm:$0xff]  ;;  %v2016_v21 = vld [vmem:[%s2445_s1 + $0x50] sm:$0xff] }
  0x12   : > { %1025 = vmatpush.bf16.msra.mxu1 %v2020_v5  ;;  %v2026_v14 = vld [vmem:[%s2445_s1 + $0xa0] sm:$0xff]  ;;  %v2025_v18 = vld [vmem:[%s2445_s1 + $0x98] sm:$0xff]  ;;  %v2024_v22 = vld [vmem:[%s2445_s1 + $0x90] sm:$0xff] }
  0x13   : > { %1114 = vmatpush.bf16.msra.mxu2 %v2028_v6  ;;  %v2034_v15 = vld [vmem:[%s2445_s1 + $0xe0] sm:$0xff]  ;;  %v2033_v19 = vld [vmem:[%s2445_s1 + $0xd8] sm:$0xff]  ;;  %v2032_v23 = vld [vmem:[%s2445_s1 + $0xd0] sm:$0xff] }
  0x14   : > { %1203 = vmatpush.bf16.msra.mxu3 %v2036_v7  ;;  %v2007_v24 = vld [vmem:[%s2445_s1 + $0x8] sm:$0xff]  ;;  %v2006_v28 = vld [vmem:[%s2445_s1] sm:$0xff]  ;;  %v1944_v33 = vld [vmem:[%s2212_s12 + $0xc] sm:$0xf0] }
  0x15   : > { %937 = vmatpush.bf16.msra.mxu0 %v2011_v8  ;;  %v2015_v25 = vld [vmem:[%s2445_s1 + $0x48] sm:$0xff]  ;;  %v2014_v29 = vld [vmem:[%s2445_s1 + $0x40] sm:$0xff]  ;;  %v1559_v35 = vld [vmem:[%s2212_s12 + $0x10] sm:$0xf0] }
  0x16   : > { %1026 = vmatpush.bf16.msra.mxu1 %v2019_v9  ;;  %v2023_v26 = vld [vmem:[%s2445_s1 + $0x88] sm:$0xff]  ;;  %v2022_v30 = vld [vmem:[%s2445_s1 + $0x80] sm:$0xff]  ;;  %v1945_v37 = vld [vmem:[%s2212_s12 + $0x14] sm:$0xf0] }
  0x17   : > { %1115 = vmatpush.bf16.msra.mxu2 %v2027_v10  ;;  %v2031_v27 = vld [vmem:[%s2445_s1 + $0xc8] sm:$0xff]  ;;  %v2030_v31 = vld [vmem:[%s2445_s1 + $0xc0] sm:$0xff]  ;;  %v1567_v39 = vld [vmem:[%s2212_s12 + $0x18] sm:$0xf0] }
  0x18   : > { %1204 = vmatpush.bf16.msra.mxu3 %v2035_v11  ;;  %v1557_v32 = vld [vmem:[%s2212_s12] sm:$0xf]  ;;  %v1942_v34 = vld [vmem:[%s2212_s12 + $0x4] sm:$0xf]  ;;  %v1565_v36 = vld [vmem:[%s2212_s12 + $0x8] sm:$0xf] }
  0x19   : > { %938 = vmatpush.bf16.msra.mxu0 %v2010_v12  ;;  %v1943_v38 = vld [vmem:[%s2212_s12 + $0xc] sm:$0xf]  ;;  %v1558_v40 = vor.u32 %v1944_v33, %v1557_v32  ;;  %v1562_v41 = vor.u32 %v1942_v34, %v1559_v35  ;;  %v1566_v42 = vor.u32 %v1945_v37, %v1565_v36  ;;  %v1573_v44 = vld [vmem:[%s2212_s12 + $0x20] sm:$0xf]  ;;  %v1948_v45 = vld [vmem:[%s2212_s12 + $0x2c] sm:$0xf0] }
  0x1a   : > { %1027 = vmatpush.bf16.msra.mxu1 %v2018_v13  ;;  %v1570_v43 = vor.u32 %v1943_v38, %v1567_v39  ;;  %v1946_v46 = vld [vmem:[%s2212_s12 + $0x24] sm:$0xf]  ;;  %v1575_v47 = vld [vmem:[%s2212_s12 + $0x30] sm:$0xf0]  ;;  %v1581_v48 = vld [vmem:[%s2212_s12 + $0x28] sm:$0xf]  ;;  %v1574_v52 = vor.u32 %v1948_v45, %v1573_v44 }
  0x1b   : > { %1116 = vmatpush.bf16.msra.mxu2 %v2026_v14  ;;  %v1949_v49 = vld [vmem:[%s2212_s12 + $0x34] sm:$0xf0]  ;;  %v1947_v50 = vld [vmem:[%s2212_s12 + $0x2c] sm:$0xf]  ;;  %v1583_v51 = vld [vmem:[%s2212_s12 + $0x38] sm:$0xf0]  ;;  %v1578_v53 = vor.u32 %v1946_v46, %v1575_v47 }
  0x1c   : > { %1205 = vmatpush.bf16.msra.mxu3 %v2034_v15  ;;  %v1582_v54 = vor.u32 %v1949_v49, %v1581_v48  ;;  %v1586_v55 = vor.u32 %v1947_v50, %v1583_v51  ;;  %v1589_v56 = vld [vmem:[%s2212_s12 + $0x40] sm:$0xf]  ;;  %v1952_v57 = vld [vmem:[%s2212_s12 + $0x4c] sm:$0xf0]  ;;  %v1950_v58 = vld [vmem:[%s2212_s12 + $0x44] sm:$0xf] }
  0x1d   : > { %939 = vmatpush.bf16.msra.mxu0 %v2009_v16  ;;  %v1591_v59 = vld [vmem:[%s2212_s12 + $0x50] sm:$0xf0]  ;;  %v1597_v60 = vld [vmem:[%s2212_s12 + $0x48] sm:$0xf]  ;;  %v1953_v61 = vld [vmem:[%s2212_s12 + $0x54] sm:$0xf0]  ;;  %v1590_v0 = vor.u32 %v1952_v57, %v1589_v56 }
  0x1e   : > { %1028 = vmatpush.bf16.msra.mxu1 %v2017_v17  ;;  %v1951_v62 = vld [vmem:[%s2212_s12 + $0x4c] sm:$0xf]  ;;  %v1599_v63 = vld [vmem:[%s2212_s12 + $0x58] sm:$0xf0]  ;;  %v1594_v1 = vor.u32 %v1950_v58, %v1591_v59  ;;  %v1598_v2 = vor.u32 %v1953_v61, %v1597_v60  ;;  %v1605_v4 = vld [vmem:[%s2212_s12 + $0x60] sm:$0xf] }
  0x1f   : > { %1117 = vmatpush.bf16.msra.mxu2 %v2025_v18  ;;  %v1602_v3 = vor.u32 %v1951_v62, %v1599_v63  ;;  %v1956_v5 = vld [vmem:[%s2212_s12 + $0x6c] sm:$0xf0]  ;;  %v1954_v6 = vld [vmem:[%s2212_s12 + $0x64] sm:$0xf]  ;;  %v1607_v7 = vld [vmem:[%s2212_s12 + $0x70] sm:$0xf0] }
  0x20   : > { %1206 = vmatpush.bf16.msra.mxu3 %v2033_v19  ;;  %v1613_v8 = vld [vmem:[%s2212_s12 + $0x68] sm:$0xf]  ;;  %v1957_v9 = vld [vmem:[%s2212_s12 + $0x74] sm:$0xf0]  ;;  %v1955_v10 = vld [vmem:[%s2212_s12 + $0x6c] sm:$0xf]  ;;  %v1606_v12 = vor.u32 %v1956_v5, %v1605_v4  ;;  %v1610_v13 = vor.u32 %v1954_v6, %v1607_v7 }
  0x21   : > { %940 = vmatpush.bf16.msra.mxu0 %v2008_v20  ;;  %v1615_v11 = vld [vmem:[%s2212_s12 + $0x78] sm:$0xf0]  ;;  %v1614_v14 = vor.u32 %v1957_v9, %v1613_v8  ;;  %v1621_v16 = vld [vmem:[%s2212_s12 + $0x80] sm:$0xf]  ;;  %v1960_v17 = vld [vmem:[%s2212_s12 + $0x8c] sm:$0xf0] }
  0x22   : > { %1029 = vmatpush.bf16.msra.mxu1 %v2016_v21  ;;  %v1618_v15 = vor.u32 %v1955_v10, %v1615_v11  ;;  %v1958_v18 = vld [vmem:[%s2212_s12 + $0x84] sm:$0xf]  ;;  %v1623_v19 = vld [vmem:[%s2212_s12 + $0x90] sm:$0xf0]  ;;  %v1629_v20 = vld [vmem:[%s2212_s12 + $0x88] sm:$0xf] }
  0x23   : > { %1118 = vmatpush.bf16.msra.mxu2 %v2024_v22  ;;  %v1961_v21 = vld [vmem:[%s2212_s12 + $0x94] sm:$0xf0]  ;;  %v1959_v22 = vld [vmem:[%s2212_s12 + $0x8c] sm:$0xf]  ;;  %v1645_v32 = vld [vmem:[%s2212_s12 + $0xa8] sm:$0xf] }
  0x24   : > { %1207 = vmatpush.bf16.msra.mxu3 %v2032_v23  ;;  %v1631_v23 = vld [vmem:[%s2212_s12 + $0x98] sm:$0xf0]  ;;  %v1965_v33 = vld [vmem:[%s2212_s12 + $0xb4] sm:$0xf0]  ;;  %v1963_v34 = vld [vmem:[%s2212_s12 + $0xac] sm:$0xf] }
  0x25   : > { %941 = vmatpush.bf16.msra.mxu0 %v2007_v24  ;;  %v1622_v24 = vor.u32 %v1960_v17, %v1621_v16  ;;  %v1647_v35 = vld [vmem:[%s2212_s12 + $0xb8] sm:$0xf0]  ;;  %v1646_v38 = vor.u32 %v1965_v33, %v1645_v32  ;;  %v1661_v44 = vld [vmem:[%s2212_s12 + $0xc8] sm:$0xf]  ;;  %v1969_v45 = vld [vmem:[%s2212_s12 + $0xd4] sm:$0xf0] }
  0x26   : > { %1030 = vmatpush.bf16.msra.mxu1 %v2015_v25  ;;  %v1626_v25 = vor.u32 %v1958_v18, %v1623_v19  ;;  %v1650_v39 = vor.u32 %v1963_v34, %v1647_v35  ;;  %v1967_v46 = vld [vmem:[%s2212_s12 + $0xcc] sm:$0xf]  ;;  %v1663_v47 = vld [vmem:[%s2212_s12 + $0xd8] sm:$0xf0]  ;;  %v1662_v50 = vor.u32 %v1969_v45, %v1661_v44  ;;  %v1677_v56 = vld [vmem:[%s2212_s12 + $0xe8] sm:$0xf] }
  0x27   : > { %1119 = vmatpush.bf16.msra.mxu2 %v2023_v26  ;;  %v1630_v26 = vor.u32 %v1961_v21, %v1629_v20  ;;  %v1666_v51 = vor.u32 %v1967_v46, %v1663_v47  ;;  %v1973_v57 = vld [vmem:[%s2212_s12 + $0xf4] sm:$0xf0]  ;;  %v1971_v58 = vld [vmem:[%s2212_s12 + $0xec] sm:$0xf]  ;;  %v1679_v59 = vld [vmem:[%s2212_s12 + $0xf8] sm:$0xf0] }
  0x28   : > { %1208 = vmatpush.bf16.msra.mxu3 %v2031_v27  ;;  %v1634_v27 = vor.u32 %v1959_v22, %v1631_v23  ;;  %v1678_v62 = vor.u32 %v1973_v57, %v1677_v56  ;;  %v1682_v63 = vor.u32 %v1971_v58, %v1679_v59  ;;  %v1693_v4 = vld [vmem:[%s2212_s12 + $0x108] sm:$0xf]  ;;  %v1977_v5 = vld [vmem:[%s2212_s12 + $0x114] sm:$0xf0]  ;;  %v1975_v6 = vld [vmem:[%s2212_s12 + $0x10c] sm:$0xf] }
  0x29   : > { %942 = vmatpush.bf16.msra.mxu0 %v2006_v28  ;;  %v1637_v28 = vld [vmem:[%s2212_s12 + $0xa0] sm:$0xf]  ;;  %v1695_v7 = vld [vmem:[%s2212_s12 + $0x118] sm:$0xf0]  ;;  %v1980_v23 = vld [vmem:[%s2212_s12 + $0x12c] sm:$0xf0] }
  0x2a   : > { %1031 = vmatpush.bf16.msra.mxu1 %v2014_v29  ;;  %v1964_v29 = vld [vmem:[%s2212_s12 + $0xac] sm:$0xf0]  ;;  %v2308_v18 = vld [vmem:[%s2446_s2] ss:$0 sm:$0xff]  ;;  %v1985_v56 = vld [vmem:[%s2212_s12 + $0x154] sm:$0xf0] }
  0x2b   : > { %1120 = vmatpush.bf16.msra.mxu2 %v2022_v30  ;;  %v1962_v30 = vld [vmem:[%s2212_s12 + $0xa4] sm:$0xf]  ;;  %v1638_v36 = vor.u32 %v1964_v29, %v1637_v28  ;;  %v1701_v22 = vld [vmem:[%s2212_s12 + $0x120] sm:$0xf]  ;;  %v1981_v28 = vld [vmem:[%s2212_s12 + $0x134] sm:$0xf0] }
  0x2c   : > { %1209 = vmatpush.bf16.msra.mxu3 %v2030_v31  ;;  %943 = vmatmul.bf16.vlgmr.msra.gmra.mxu0 %v1558_v40  ;;  %v1639_v31 = vld [vmem:[%s2212_s12 + $0xb0] sm:$0xf0]  ;;  %v1653_v40 = vld [vmem:[%s2212_s12 + $0xc0] sm:$0xf]  ;;  %v1979_v29 = vld [vmem:[%s2212_s12 + $0x12c] sm:$0xf]  ;;  %v1702_v34 = vor.u32 %v1980_v23, %v1701_v22 }
  0x2d   : > { %1032 = vmatmul.bf16.vlgmr.msra.gmra.mxu1 %v1562_v41  ;;  %v1642_v37 = vor.u32 %v1962_v30, %v1639_v31  ;;  %v1968_v41 = vld [vmem:[%s2212_s12 + $0xcc] sm:$0xf0]  ;;  %v1711_v30 = vld [vmem:[%s2212_s12 + $0x138] sm:$0xf0]  ;;  %v1983_v57 = vld [vmem:[%s2212_s12 + $0x14c] sm:$0xf] }
  0x2e   : > { %1121 = vmatmul.bf16.vlgmr.msra.gmra.mxu2 %v1566_v42  ;;  %v1966_v42 = vld [vmem:[%s2212_s12 + $0xc4] sm:$0xf]  ;;  %v1654_v48 = vor.u32 %v1968_v41, %v1653_v40  ;;  %v1714_v40 = vor.u32 %v1979_v29, %v1711_v30  ;;  %v1727_v58 = vld [vmem:[%s2212_s12 + $0x158] sm:$0xf0]  ;;  %v1987_v22 = vld [vmem:[%s2212_s12 + $0x16c] sm:$0xf] }
  0x2f   : > { %1210 = vmatmul.bf16.vlgmr.msra.gmra.mxu3 %v1570_v43  ;;  %v1655_v43 = vld [vmem:[%s2212_s12 + $0xd0] sm:$0xf0]  ;;  %v1743_v23 = vld [vmem:[%s2212_s12 + $0x178] sm:$0xf0] }
  0x30   : > { %v1658_v49 = vor.u32 %v1966_v42, %v1655_v43 }
  0x3c   : > { %948 = vmatmul.bf16.gmra.mxu0 %v1574_v52  ;;  %v1669_v52 = vld [vmem:[%s2212_s12 + $0xe0] sm:$0xf] }
  0x3d   : > { %1037 = vmatmul.bf16.gmra.mxu1 %v1578_v53  ;;  %v1972_v53 = vld [vmem:[%s2212_s12 + $0xec] sm:$0xf0] }
  0x3e   : > { %1126 = vmatmul.bf16.gmra.mxu2 %v1582_v54  ;;  %v1970_v54 = vld [vmem:[%s2212_s12 + $0xe4] sm:$0xf]  ;;  %v1670_v60 = vor.u32 %v1972_v53, %v1669_v52 }
  0x3f   : > { %1215 = vmatmul.bf16.gmra.mxu3 %v1586_v55  ;;  %v1671_v55 = vld [vmem:[%s2212_s12 + $0xf0] sm:$0xf0]  ;;  %v1982_v53 = vld [vmem:[%s2212_s12 + $0x144] sm:$0xf] }
  0x40   : > { %v1674_v61 = vor.u32 %v1970_v54, %v1671_v55  ;;  %v1719_v54 = vld [vmem:[%s2212_s12 + $0x150] sm:$0xf0]  ;;  %v1725_v55 = vld [vmem:[%s2212_s12 + $0x148] sm:$0xf] }
  0x4c   : > { %953 = vmatmul.bf16.gmra.mxu0 %v1590_v0  ;;  %v1685_v0 = vld [vmem:[%s2212_s12 + $0x100] sm:$0xf] }
  0x4d   : > { %1042 = vmatmul.bf16.gmra.mxu1 %v1594_v1  ;;  %v1976_v1 = vld [vmem:[%s2212_s12 + $0x10c] sm:$0xf0] }
  0x4e   : > { %1131 = vmatmul.bf16.gmra.mxu2 %v1598_v2  ;;  %v1974_v2 = vld [vmem:[%s2212_s12 + $0x104] sm:$0xf]  ;;  %v1686_v8 = vor.u32 %v1976_v1, %v1685_v0 }
  0x4f   : > { %1220 = vmatmul.bf16.gmra.mxu3 %v1602_v3  ;;  %v1687_v3 = vld [vmem:[%s2212_s12 + $0x110] sm:$0xf0] }
  0x50   : > { %v1690_v9 = vor.u32 %v1974_v2, %v1687_v3  ;;  %v1726_v3 = vor.u32 %v1985_v56, %v1725_v55 }
  0x5c   : > { %958 = vmatmul.bf16.gmra.mxu0 %v1606_v12  ;;  %v1694_v12 = vor.u32 %v1977_v5, %v1693_v4  ;;  %v1730_v4 = vor.u32 %v1983_v57, %v1727_v58 }
  0x5d   : > { %1047 = vmatmul.bf16.gmra.mxu1 %v1610_v13  ;;  %v1698_v13 = vor.u32 %v1975_v6, %v1695_v7 }
  0x5e   : > { %1136 = vmatmul.bf16.gmra.mxu2 %v1614_v14 }
  0x5f   : > { %1225 = vmatmul.bf16.gmra.mxu3 %v1618_v15 }
  0x6c   : > { %963 = vmatmul.bf16.gmra.mxu0 %v1622_v24 }
  0x6d   : > { %1052 = vmatmul.bf16.gmra.mxu1 %v1626_v25  ;;  %v1978_v25 = vld [vmem:[%s2212_s12 + $0x124] sm:$0xf] }
  0x6e   : > { %1141 = vmatmul.bf16.gmra.mxu2 %v1630_v26  ;;  %v1703_v26 = vld [vmem:[%s2212_s12 + $0x130] sm:$0xf0] }
  0x6f   : > { %1230 = vmatmul.bf16.gmra.mxu3 %v1634_v27  ;;  %v1709_v27 = vld [vmem:[%s2212_s12 + $0x128] sm:$0xf]  ;;  %v1706_v35 = vor.u32 %v1978_v25, %v1703_v26 }
  0x7c   : > { %968 = vmatmul.bf16.gmra.mxu0 %v1638_v36 }
  0x7d   : > { %1057 = vmatmul.bf16.gmra.mxu1 %v1642_v37 }
  0x7e   : > { %1146 = vmatmul.bf16.gmra.mxu2 %v1646_v38 }
  0x7f   : > { %1235 = vmatmul.bf16.gmra.mxu3 %v1650_v39  ;;  %v1710_v39 = vor.u32 %v1981_v28, %v1709_v27 }
  0x8c   : > { %973 = vmatmul.bf16.gmra.mxu0 %v1654_v48 }
  0x8d   : > { %1062 = vmatmul.bf16.gmra.mxu1 %v1658_v49 }
  0x8e   : > { %1151 = vmatmul.bf16.gmra.mxu2 %v1662_v50  ;;  %v1717_v50 = vld [vmem:[%s2212_s12 + $0x140] sm:$0xf] }
  0x8f   : > { %1240 = vmatmul.bf16.gmra.mxu3 %v1666_v51  ;;  %v1984_v51 = vld [vmem:[%s2212_s12 + $0x14c] sm:$0xf0] }
  0x9c   : > { %978 = vmatmul.bf16.gmra.mxu0 %v1670_v60 }
  0x9d   : > { %1067 = vmatmul.bf16.gmra.mxu1 %v1674_v61 }
  0x9e   : > { %1156 = vmatmul.bf16.gmra.mxu2 %v1678_v62  ;;  %v1718_v62 = vor.u32 %v1984_v51, %v1717_v50  ;;  %v1991_v50 = vld [vmem:[%s2212_s12 + $0x18c] sm:$0xf]  ;;  %v1759_v51 = vld [vmem:[%s2212_s12 + $0x198] sm:$0xf0] }
  0x9f   : > { %1245 = vmatmul.bf16.gmra.mxu3 %v1682_v63  ;;  %v1722_v63 = vor.u32 %v1982_v53, %v1719_v54 }
  0xa9   : > { %v944_v10 = vpop.f32.mrf.mxu0 }
  0xaa   : > { %v1033_v11 = vpop.f32.mrf.mxu1 }
  0xab   : > { %v1034_v14 = vadd.f32 %v1033_v11, %v944_v10 }
  0xac   : > { %983 = vmatmul.bf16.gmra.mxu0 %v1686_v8 }
  0xad   : > { %1072 = vmatmul.bf16.gmra.mxu1 %v1690_v9 }
  0xae   : > { %1161 = vmatmul.bf16.gmra.mxu2 %v1694_v12 }
  0xaf   : > { %1250 = vmatmul.bf16.gmra.mxu3 %v1698_v13 }
  0xb1   : > { %v1122_v15 = vpop.f32.mrf.mxu2  ;;  %v946_v19 = vpop.f32.mrf.mxu0 }
  0xb2   : > { %v1211_v16 = vpop.f32.mrf.mxu3  ;;  %v1123_v17 = vadd.f32 %v1122_v15, %v1034_v14  ;;  %v1035_v20 = vpop.f32.mrf.mxu1  ;;  %v1733_v14 = vld [vmem:[%s2212_s12 + $0x160] sm:$0xf]  ;;  %v1988_v15 = vld [vmem:[%s2212_s12 + $0x16c] sm:$0xf0] }
  0xb3   : > { %v1036_v31 = vadd.f32 %v1035_v20, %v946_v19  ;;  %v1735_v19 = vld [vmem:[%s2212_s12 + $0x170] sm:$0xf0]  ;;  %v1741_v20 = vld [vmem:[%s2212_s12 + $0x168] sm:$0xf]  ;;  %v1734_v27 = vor.u32 %v1988_v15, %v1733_v14  ;;  %v1995_v14 = vld [vmem:[%s2212_s12 + $0x1ac] sm:$0xf] }
  0xb4   : > { %v1212_v21 = vadd.f32 %v1211_v16, %v1123_v17  ;;  %v1986_v17 = vld [vmem:[%s2212_s12 + $0x164] sm:$0xf]  ;;  %v1775_v15 = vld [vmem:[%s2212_s12 + $0x1b8] sm:$0xf0] }
  0xb5   : > { %v1738_v28 = vor.u32 %v1986_v17, %v1735_v19 }
  0xb6   : > { %v1394_v24 = vadd.f32 %v2308_v18, %v1212_v21  ;;  %v1989_v21 = vld [vmem:[%s2212_s12 + $0x174] sm:$0xf0] }
  0xb8   : > { %1426 = vst [vmem:[%s2313_s21] sm:$0xff] %v1394_v24 }
  0xb9   : > { %v1124_v32 = vpop.f32.mrf.mxu2  ;;  %v949_v37 = vpop.f32.mrf.mxu0 }
  0xba   : > { %v1213_v33 = vpop.f32.mrf.mxu3  ;;  %v1125_v36 = vadd.f32 %v1124_v32, %v1036_v31  ;;  %v1038_v38 = vpop.f32.mrf.mxu1  ;;  %v1742_v32 = vor.u32 %v1989_v21, %v1741_v20 }
  0xbb   : > { %v1039_v43 = vadd.f32 %v1038_v38, %v949_v37 }
  0xbc   : > { %v1214_v41 = vadd.f32 %v1213_v33, %v1125_v36  ;;  %988 = vmatmul.bf16.gmra.mxu0 %v1702_v34  ;;  %v1746_v33 = vor.u32 %v1987_v22, %v1743_v23 }
  0xbd   : > { %1077 = vmatmul.bf16.gmra.mxu1 %v1706_v35 }
  0xbe   : > { %v1395_v42 = vadd.f32 %v2308_v18, %v1214_v41  ;;  %1166 = vmatmul.bf16.gmra.mxu2 %v1710_v39 }
  0xbf   : > { %1255 = vmatmul.bf16.gmra.mxu3 %v1714_v40 }
  0xc0   : > { %1427 = vst [vmem:[%s2313_s21 + $0x8] sm:$0xff] %v1395_v42 }
  0xc1   : > { %v1127_v44 = vpop.f32.mrf.mxu2  ;;  %v951_v47 = vpop.f32.mrf.mxu0 }
  0xc2   : > { %v1216_v45 = vpop.f32.mrf.mxu3  ;;  %v1128_v46 = vadd.f32 %v1127_v44, %v1039_v43  ;;  %v1040_v48 = vpop.f32.mrf.mxu1  ;;  %v1749_v43 = vld [vmem:[%s2212_s12 + $0x180] sm:$0xf]  ;;  %v1992_v44 = vld [vmem:[%s2212_s12 + $0x18c] sm:$0xf0] }
  0xc3   : > { %v1041_v59 = vadd.f32 %v1040_v48, %v951_v47  ;;  %v1751_v47 = vld [vmem:[%s2212_s12 + $0x190] sm:$0xf0]  ;;  %v1757_v48 = vld [vmem:[%s2212_s12 + $0x188] sm:$0xf]  ;;  %v1750_v55 = vor.u32 %v1992_v44, %v1749_v43  ;;  %v1999_v43 = vld [vmem:[%s2212_s12 + $0x1cc] sm:$0xf] }
  0xc4   : > { %v1217_v49 = vadd.f32 %v1216_v45, %v1128_v46  ;;  %v1990_v46 = vld [vmem:[%s2212_s12 + $0x184] sm:$0xf]  ;;  %v1791_v44 = vld [vmem:[%s2212_s12 + $0x1d8] sm:$0xf0] }
  0xc5   : > { %v1754_v56 = vor.u32 %v1990_v46, %v1751_v47 }
  0xc6   : > { %v1396_v52 = vadd.f32 %v2308_v18, %v1217_v49  ;;  %v1993_v49 = vld [vmem:[%s2212_s12 + $0x194] sm:$0xf0] }
  0xc8   : > { %1428 = vst [vmem:[%s2313_s21 + $0x10] sm:$0xff] %v1396_v52 }
  0xc9   : > { %v1129_v60 = vpop.f32.mrf.mxu2  ;;  %v954_v1 = vpop.f32.mrf.mxu0 }
  0xca   : > { %v1218_v61 = vpop.f32.mrf.mxu3  ;;  %v1130_v0 = vadd.f32 %v1129_v60, %v1041_v59  ;;  %v1043_v2 = vpop.f32.mrf.mxu1  ;;  %v1758_v60 = vor.u32 %v1993_v49, %v1757_v48 }
  0xcb   : > { %v1044_v7 = vadd.f32 %v1043_v2, %v954_v1 }
  0xcc   : > { %v1219_v5 = vadd.f32 %v1218_v61, %v1130_v0  ;;  %993 = vmatmul.bf16.gmra.mxu0 %v1718_v62  ;;  %v1762_v61 = vor.u32 %v1991_v50, %v1759_v51 }
  0xcd   : > { %1082 = vmatmul.bf16.gmra.mxu1 %v1722_v63 }
  0xce   : > { %v1397_v6 = vadd.f32 %v2308_v18, %v1219_v5  ;;  %1171 = vmatmul.bf16.gmra.mxu2 %v1726_v3 }
  0xcf   : > { %1260 = vmatmul.bf16.gmra.mxu3 %v1730_v4 }
  0xd0   : > { %1429 = vst [vmem:[%s2313_s21 + $0x18] sm:$0xff] %v1397_v6 }
  0xd1   : > { %v1132_v8 = vpop.f32.mrf.mxu2  ;;  %v956_v11 = vpop.f32.mrf.mxu0 }
  0xd2   : > { %v1221_v9 = vpop.f32.mrf.mxu3  ;;  %v1133_v10 = vadd.f32 %v1132_v8, %v1044_v7  ;;  %v1045_v12 = vpop.f32.mrf.mxu1  ;;  %v1765_v7 = vld [vmem:[%s2212_s12 + $0x1a0] sm:$0xf]  ;;  %v1996_v8 = vld [vmem:[%s2212_s12 + $0x1ac] sm:$0xf0] }
  0xd3   : > { %v1046_v24 = vadd.f32 %v1045_v12, %v956_v11  ;;  %v1767_v11 = vld [vmem:[%s2212_s12 + $0x1b0] sm:$0xf0]  ;;  %v1773_v12 = vld [vmem:[%s2212_s12 + $0x1a8] sm:$0xf]  ;;  %v1766_v20 = vor.u32 %v1996_v8, %v1765_v7  ;;  %v2003_v7 = vld [vmem:[%s2212_s12 + $0x1ec] sm:$0xf] }
  0xd4   : > { %v1222_v13 = vadd.f32 %v1221_v9, %v1133_v10  ;;  %v1994_v10 = vld [vmem:[%s2212_s12 + $0x1a4] sm:$0xf]  ;;  %v1807_v8 = vld [vmem:[%s2212_s12 + $0x1f8] sm:$0xf0] }
  0xd5   : > { %v1770_v21 = vor.u32 %v1994_v10, %v1767_v11 }
  0xd6   : > { %v1398_v16 = vadd.f32 %v2308_v18, %v1222_v13  ;;  %v1997_v13 = vld [vmem:[%s2212_s12 + $0x1b4] sm:$0xf0] }
  0xd8   : > { %1430 = vst [vmem:[%s2313_s21 + $0x20] sm:$0xff] %v1398_v16 }
  0xd9   : > { %v1134_v25 = vpop.f32.mrf.mxu2  ;;  %v959_v30 = vpop.f32.mrf.mxu0 }
  0xda   : > { %v1223_v26 = vpop.f32.mrf.mxu3  ;;  %v1135_v29 = vadd.f32 %v1134_v25, %v1046_v24  ;;  %v1048_v31 = vpop.f32.mrf.mxu1  ;;  %v1774_v25 = vor.u32 %v1997_v13, %v1773_v12 }
  0xdb   : > { %v1049_v36 = vadd.f32 %v1048_v31, %v959_v30 }
  0xdc   : > { %v1224_v34 = vadd.f32 %v1223_v26, %v1135_v29  ;;  %998 = vmatmul.bf16.gmra.mxu0 %v1734_v27  ;;  %v1778_v26 = vor.u32 %v1995_v14, %v1775_v15 }
  0xdd   : > { %1087 = vmatmul.bf16.gmra.mxu1 %v1738_v28 }
  0xde   : > { %v1399_v35 = vadd.f32 %v2308_v18, %v1224_v34  ;;  %1176 = vmatmul.bf16.gmra.mxu2 %v1742_v32 }
  0xdf   : > { %1265 = vmatmul.bf16.gmra.mxu3 %v1746_v33 }
  0xe0   : > { %1431 = vst [vmem:[%s2313_s21 + $0x28] sm:$0xff] %v1399_v35 }
  0xe1   : > { %v1137_v37 = vpop.f32.mrf.mxu2  ;;  %v961_v40 = vpop.f32.mrf.mxu0 }
  0xe2   : > { %v1226_v38 = vpop.f32.mrf.mxu3  ;;  %v1138_v39 = vadd.f32 %v1137_v37, %v1049_v36  ;;  %v1050_v41 = vpop.f32.mrf.mxu1  ;;  %v1781_v36 = vld [vmem:[%s2212_s12 + $0x1c0] sm:$0xf]  ;;  %v2000_v37 = vld [vmem:[%s2212_s12 + $0x1cc] sm:$0xf0] }
  0xe3   : > { %v1051_v52 = vadd.f32 %v1050_v41, %v961_v40  ;;  %v1783_v40 = vld [vmem:[%s2212_s12 + $0x1d0] sm:$0xf0]  ;;  %v1789_v41 = vld [vmem:[%s2212_s12 + $0x1c8] sm:$0xf]  ;;  %v1782_v48 = vor.u32 %v2000_v37, %v1781_v36 }
  0xe4   : > { %v1227_v42 = vadd.f32 %v1226_v38, %v1138_v39  ;;  %v1998_v39 = vld [vmem:[%s2212_s12 + $0x1c4] sm:$0xf] }
  0xe5   : > { %v1786_v49 = vor.u32 %v1998_v39, %v1783_v40 }
  0xe6   : > { %v1400_v45 = vadd.f32 %v2308_v18, %v1227_v42  ;;  %v2001_v42 = vld [vmem:[%s2212_s12 + $0x1d4] sm:$0xf0] }
  0xe8   : > { %1432 = vst [vmem:[%s2313_s21 + $0x30] sm:$0xff] %v1400_v45 }
  0xe9   : > { %v1139_v53 = vpop.f32.mrf.mxu2  ;;  %v964_v58 = vpop.f32.mrf.mxu0 }
  0xea   : > { %v1228_v54 = vpop.f32.mrf.mxu3  ;;  %v1140_v57 = vadd.f32 %v1139_v53, %v1051_v52  ;;  %v1053_v59 = vpop.f32.mrf.mxu1  ;;  %v1790_v53 = vor.u32 %v2001_v42, %v1789_v41 }
  0xeb   : > { %v1054_v0 = vadd.f32 %v1053_v59, %v964_v58 }
  0xec   : > { %v1229_v62 = vadd.f32 %v1228_v54, %v1140_v57  ;;  %1003 = vmatmul.bf16.gmra.mxu0 %v1750_v55  ;;  %v1794_v54 = vor.u32 %v1999_v43, %v1791_v44 }
  0xed   : > { %1092 = vmatmul.bf16.gmra.mxu1 %v1754_v56 }
  0xee   : > { %v1401_v63 = vadd.f32 %v2308_v18, %v1229_v62  ;;  %1181 = vmatmul.bf16.gmra.mxu2 %v1758_v60 }
  0xef   : > { %1270 = vmatmul.bf16.gmra.mxu3 %v1762_v61 }
  0xf0   : > { %1433 = vst [vmem:[%s2313_s21 + $0x38] sm:$0xff] %v1401_v63 }
  0xf1   : > { %v1142_v1 = vpop.f32.mrf.mxu2  ;;  %v966_v4 = vpop.f32.mrf.mxu0 }
  0xf2   : > { %v1231_v2 = vpop.f32.mrf.mxu3  ;;  %v1143_v3 = vadd.f32 %v1142_v1, %v1054_v0  ;;  %v1055_v5 = vpop.f32.mrf.mxu1  ;;  %v1797_v0 = vld [vmem:[%s2212_s12 + $0x1e0] sm:$0xf]  ;;  %v2004_v1 = vld [vmem:[%s2212_s12 + $0x1ec] sm:$0xf0] }
  0xf3   : > { %v1056_v16 = vadd.f32 %v1055_v5, %v966_v4  ;;  %v1799_v4 = vld [vmem:[%s2212_s12 + $0x1f0] sm:$0xf0]  ;;  %v1805_v5 = vld [vmem:[%s2212_s12 + $0x1e8] sm:$0xf]  ;;  %v1798_v12 = vor.u32 %v2004_v1, %v1797_v0 }
  0xf4   : > { %v1232_v6 = vadd.f32 %v1231_v2, %v1143_v3  ;;  %v2002_v3 = vld [vmem:[%s2212_s12 + $0x1e4] sm:$0xf] }
  0xf5   : > { %v1802_v13 = vor.u32 %v2002_v3, %v1799_v4 }
  0xf6   : > { %v1402_v9 = vadd.f32 %v2308_v18, %v1232_v6  ;;  %v2005_v6 = vld [vmem:[%s2212_s12 + $0x1f4] sm:$0xf0] }
  0xf8   : > { %1434 = vst [vmem:[%s2313_s21 + $0x40] sm:$0xff] %v1402_v9 }
  0xf9   : > { %v1144_v17 = vpop.f32.mrf.mxu2  ;;  %v969_v23 = vpop.f32.mrf.mxu0 }
  0xfa   : > { %v1233_v19 = vpop.f32.mrf.mxu3  ;;  %v1145_v22 = vadd.f32 %v1144_v17, %v1056_v16  ;;  %v1058_v24 = vpop.f32.mrf.mxu1  ;;  %v1806_v17 = vor.u32 %v2005_v6, %v1805_v5 }
  0xfb   : > { %v1059_v29 = vadd.f32 %v1058_v24, %v969_v23 }
  0xfc   : > { %v1234_v27 = vadd.f32 %v1233_v19, %v1145_v22  ;;  %1008 = vmatmul.bf16.gmra.mxu0 %v1766_v20  ;;  %v1810_v19 = vor.u32 %v2003_v7, %v1807_v8 }
  0xfd   : > { %1097 = vmatmul.bf16.gmra.mxu1 %v1770_v21 }
  0xfe   : > { %v1403_v28 = vadd.f32 %v2308_v18, %v1234_v27  ;;  %1186 = vmatmul.bf16.gmra.mxu2 %v1774_v25 }
  0xff   : > { %1275 = vmatmul.bf16.gmra.mxu3 %v1778_v26 }
 0x100   : > { %1435 = vst [vmem:[%s2313_s21 + $0x48] sm:$0xff] %v1403_v28 }
 0x101   : > { %v1147_v30 = vpop.f32.mrf.mxu2  ;;  %v971_v33 = vpop.f32.mrf.mxu0 }
 0x102   : > { %v1236_v31 = vpop.f32.mrf.mxu3  ;;  %v1148_v32 = vadd.f32 %v1147_v30, %v1059_v29  ;;  %v1060_v34 = vpop.f32.mrf.mxu1 }
 0x103   : > { %v1061_v45 = vadd.f32 %v1060_v34, %v971_v33 }
 0x104   : > { %v1237_v35 = vadd.f32 %v1236_v31, %v1148_v32 }
 0x106   : > { %v1404_v38 = vadd.f32 %v2308_v18, %v1237_v35 }
 0x108   : > { %1436 = vst [vmem:[%s2313_s21 + $0x50] sm:$0xff] %v1404_v38 }
 0x109   : > { %v1149_v46 = vpop.f32.mrf.mxu2  ;;  %v974_v51 = vpop.f32.mrf.mxu0 }
 0x10a   : > { %v1238_v47 = vpop.f32.mrf.mxu3  ;;  %v1150_v50 = vadd.f32 %v1149_v46, %v1061_v45  ;;  %v1063_v52 = vpop.f32.mrf.mxu1 }
 0x10b   : > { %v1064_v57 = vadd.f32 %v1063_v52, %v974_v51 }
 0x10c   : > { %v1239_v55 = vadd.f32 %v1238_v47, %v1150_v50  ;;  %1013 = vmatmul.bf16.gmra.mxu0 %v1782_v48 }
 0x10d   : > { %1102 = vmatmul.bf16.gmra.mxu1 %v1786_v49 }
 0x10e   : > { %v1405_v56 = vadd.f32 %v2308_v18, %v1239_v55  ;;  %1191 = vmatmul.bf16.gmra.mxu2 %v1790_v53 }
 0x10f   : > { %1280 = vmatmul.bf16.gmra.mxu3 %v1794_v54 }
 0x110   : > { %1437 = vst [vmem:[%s2313_s21 + $0x58] sm:$0xff] %v1405_v56 }
 0x111   : > { %v1152_v58 = vpop.f32.mrf.mxu2  ;;  %v976_v61 = vpop.f32.mrf.mxu0 }
 0x112   : > { %v1241_v59 = vpop.f32.mrf.mxu3  ;;  %v1153_v60 = vadd.f32 %v1152_v58, %v1064_v57  ;;  %v1065_v62 = vpop.f32.mrf.mxu1 }
 0x113   : > { %v1066_v9 = vadd.f32 %v1065_v62, %v976_v61 }
 0x114   : > { %v1242_v63 = vadd.f32 %v1241_v59, %v1153_v60 }
 0x116   : > { %v1406_v2 = vadd.f32 %v2308_v18, %v1242_v63 }
 0x118   : > { %1438 = vst [vmem:[%s2313_s21 + $0x60] sm:$0xff] %v1406_v2 }
 0x119   : > { %v1154_v10 = vpop.f32.mrf.mxu2  ;;  %v979_v15 = vpop.f32.mrf.mxu0 }
 0x11a   : > { %v1243_v11 = vpop.f32.mrf.mxu3  ;;  %v1155_v14 = vadd.f32 %v1154_v10, %v1066_v9  ;;  %v1068_v16 = vpop.f32.mrf.mxu1 }
 0x11b   : > { %v1069_v22 = vadd.f32 %v1068_v16, %v979_v15 }
 0x11c   : > { %v1244_v20 = vadd.f32 %v1243_v11, %v1155_v14  ;;  %1018 = vmatmul.bf16.gmra.mxu0 %v1798_v12 }
 0x11d   : > { %1107 = vmatmul.bf16.gmra.mxu1 %v1802_v13 }
 0x11e   : > { %v1407_v21 = vadd.f32 %v2308_v18, %v1244_v20  ;;  %1196 = vmatmul.bf16.gmra.mxu2 %v1806_v17 }
 0x11f   : > { %1285 = vmatmul.bf16.gmra.mxu3 %v1810_v19 }
 0x120   : > { %1439 = vst [vmem:[%s2313_s21 + $0x68] sm:$0xff] %v1407_v21 }
 0x121   : > { %v1157_v23 = vpop.f32.mrf.mxu2  ;;  %v981_v26 = vpop.f32.mrf.mxu0 }
 0x122   : > { %v1246_v24 = vpop.f32.mrf.mxu3  ;;  %v1158_v25 = vadd.f32 %v1157_v23, %v1069_v22  ;;  %v1070_v27 = vpop.f32.mrf.mxu1 }
 0x123   : > { %v1071_v30 = vadd.f32 %v1070_v27, %v981_v26 }
 0x124   : > { %v1247_v28 = vadd.f32 %v1246_v24, %v1158_v25 }
 0x126   : > { %v1408_v29 = vadd.f32 %v2308_v18, %v1247_v28 }
 0x128   : > { %1440 = vst [vmem:[%s2313_s21 + $0x70] sm:$0xff] %v1408_v29 }
 0x129   : > { %v1159_v31 = vpop.f32.mrf.mxu2  ;;  %v984_v34 = vpop.f32.mrf.mxu0 }
 0x12a   : > { %v1248_v32 = vpop.f32.mrf.mxu3  ;;  %v1160_v33 = vadd.f32 %v1159_v31, %v1071_v30  ;;  %v1073_v35 = vpop.f32.mrf.mxu1 }
 0x12b   : > { %v1074_v38 = vadd.f32 %v1073_v35, %v984_v34 }
 0x12c   : > { %v1249_v36 = vadd.f32 %v1248_v32, %v1160_v33 }
 0x12e   : > { %v1409_v37 = vadd.f32 %v2308_v18, %v1249_v36 }
 0x130   : > { %1441 = vst [vmem:[%s2313_s21 + $0x78] sm:$0xff] %v1409_v37 }
 0x131   : > { %v1162_v39 = vpop.f32.mrf.mxu2  ;;  %v986_v42 = vpop.f32.mrf.mxu0 }
 0x132   : > { %v1251_v40 = vpop.f32.mrf.mxu3  ;;  %v1163_v41 = vadd.f32 %v1162_v39, %v1074_v38  ;;  %v1075_v43 = vpop.f32.mrf.mxu1 }
 0x133   : > { %v1076_v46 = vadd.f32 %v1075_v43, %v986_v42 }
 0x134   : > { %v1252_v44 = vadd.f32 %v1251_v40, %v1163_v41 }
 0x136   : > { %v1410_v45 = vadd.f32 %v2308_v18, %v1252_v44 }
 0x138   : > { %1442 = vst [vmem:[%s2313_s21 + $0x80] sm:$0xff] %v1410_v45 }
 0x139   : > { %v1164_v47 = vpop.f32.mrf.mxu2  ;;  %v989_v50 = vpop.f32.mrf.mxu0 }
 0x13a   : > { %v1253_v48 = vpop.f32.mrf.mxu3  ;;  %v1165_v49 = vadd.f32 %v1164_v47, %v1076_v46  ;;  %v1078_v51 = vpop.f32.mrf.mxu1 }
 0x13b   : > { %v1079_v54 = vadd.f32 %v1078_v51, %v989_v50 }
 0x13c   : > { %v1254_v52 = vadd.f32 %v1253_v48, %v1165_v49 }
 0x13e   : > { %v1411_v53 = vadd.f32 %v2308_v18, %v1254_v52 }
 0x140   : > { %1443 = vst [vmem:[%s2313_s21 + $0x88] sm:$0xff] %v1411_v53 }
 0x141   : > { %v1167_v55 = vpop.f32.mrf.mxu2  ;;  %v991_v58 = vpop.f32.mrf.mxu0 }
 0x142   : > { %v1256_v56 = vpop.f32.mrf.mxu3  ;;  %v1168_v57 = vadd.f32 %v1167_v55, %v1079_v54  ;;  %v1080_v59 = vpop.f32.mrf.mxu1 }
 0x143   : > { %v1081_v62 = vadd.f32 %v1080_v59, %v991_v58 }
 0x144   : > { %v1257_v60 = vadd.f32 %v1256_v56, %v1168_v57 }
 0x146   : > { %v1412_v61 = vadd.f32 %v2308_v18, %v1257_v60 }
 0x148   : > { %1444 = vst [vmem:[%s2313_s21 + $0x90] sm:$0xff] %v1412_v61 }
 0x149   : > { %v1169_v63 = vpop.f32.mrf.mxu2  ;;  %v994_v2 = vpop.f32.mrf.mxu0 }
 0x14a   : > { %v1258_v0 = vpop.f32.mrf.mxu3  ;;  %v1170_v1 = vadd.f32 %v1169_v63, %v1081_v62  ;;  %v1083_v3 = vpop.f32.mrf.mxu1 }
 0x14b   : > { %v1084_v6 = vadd.f32 %v1083_v3, %v994_v2 }
 0x14c   : > { %v1259_v4 = vadd.f32 %v1258_v0, %v1170_v1 }
 0x14e   : > { %v1413_v5 = vadd.f32 %v2308_v18, %v1259_v4 }
 0x150   : > { %1445 = vst [vmem:[%s2313_s21 + $0x98] sm:$0xff] %v1413_v5 }
 0x151   : > { %v1172_v7 = vpop.f32.mrf.mxu2  ;;  %v996_v10 = vpop.f32.mrf.mxu0 }
 0x152   : > { %v1261_v8 = vpop.f32.mrf.mxu3  ;;  %v1173_v9 = vadd.f32 %v1172_v7, %v1084_v6  ;;  %v1085_v11 = vpop.f32.mrf.mxu1 }
 0x153   : > { %v1086_v14 = vadd.f32 %v1085_v11, %v996_v10 }
 0x154   : > { %v1262_v12 = vadd.f32 %v1261_v8, %v1173_v9 }
 0x156   : > { %v1414_v13 = vadd.f32 %v2308_v18, %v1262_v12 }
 0x158   : > { %1446 = vst [vmem:[%s2313_s21 + $0xa0] sm:$0xff] %v1414_v13 }
 0x159   : > { %v1174_v15 = vpop.f32.mrf.mxu2  ;;  %v999_v19 = vpop.f32.mrf.mxu0 }
 0x15a   : > { %v1263_v16 = vpop.f32.mrf.mxu3  ;;  %v1175_v17 = vadd.f32 %v1174_v15, %v1086_v14  ;;  %v1088_v20 = vpop.f32.mrf.mxu1 }
 0x15b   : > { %v1089_v23 = vadd.f32 %v1088_v20, %v999_v19 }
 0x15c   : > { %v1264_v21 = vadd.f32 %v1263_v16, %v1175_v17 }
 0x15e   : > { %v1415_v22 = vadd.f32 %v2308_v18, %v1264_v21 }
 0x160   : > { %1447 = vst [vmem:[%s2313_s21 + $0xa8] sm:$0xff] %v1415_v22 }
 0x161   : > { %v1177_v24 = vpop.f32.mrf.mxu2  ;;  %v1001_v27 = vpop.f32.mrf.mxu0 }
 0x162   : > { %v1266_v25 = vpop.f32.mrf.mxu3  ;;  %v1178_v26 = vadd.f32 %v1177_v24, %v1089_v23  ;;  %v1090_v28 = vpop.f32.mrf.mxu1 }
 0x163   : > { %v1091_v31 = vadd.f32 %v1090_v28, %v1001_v27 }
 0x164   : > { %v1267_v29 = vadd.f32 %v1266_v25, %v1178_v26 }
 0x166   : > { %v1416_v30 = vadd.f32 %v2308_v18, %v1267_v29 }
 0x168   : > { %1448 = vst [vmem:[%s2313_s21 + $0xb0] sm:$0xff] %v1416_v30 }
 0x169   : > { %v1179_v32 = vpop.f32.mrf.mxu2  ;;  %v1004_v35 = vpop.f32.mrf.mxu0 }
 0x16a   : > { %v1268_v33 = vpop.f32.mrf.mxu3  ;;  %v1180_v34 = vadd.f32 %v1179_v32, %v1091_v31  ;;  %v1093_v36 = vpop.f32.mrf.mxu1 }
 0x16b   : > { %v1094_v39 = vadd.f32 %v1093_v36, %v1004_v35 }
 0x16c   : > { %v1269_v37 = vadd.f32 %v1268_v33, %v1180_v34 }
 0x16e   : > { %v1417_v38 = vadd.f32 %v2308_v18, %v1269_v37 }
 0x170   : > { %1449 = vst [vmem:[%s2313_s21 + $0xb8] sm:$0xff] %v1417_v38 }
 0x171   : > { %v1182_v40 = vpop.f32.mrf.mxu2  ;;  %v1006_v43 = vpop.f32.mrf.mxu0 }
 0x172   : > { %v1271_v41 = vpop.f32.mrf.mxu3  ;;  %v1183_v42 = vadd.f32 %v1182_v40, %v1094_v39  ;;  %v1095_v44 = vpop.f32.mrf.mxu1 }
 0x173   : > { %v1096_v47 = vadd.f32 %v1095_v44, %v1006_v43 }
 0x174   : > { %v1272_v45 = vadd.f32 %v1271_v41, %v1183_v42 }
 0x176   : > { %v1418_v46 = vadd.f32 %v2308_v18, %v1272_v45 }
 0x178   : > { %1450 = vst [vmem:[%s2313_s21 + $0xc0] sm:$0xff] %v1418_v46 }
 0x179   : > { %v1184_v48 = vpop.f32.mrf.mxu2  ;;  %v1009_v51 = vpop.f32.mrf.mxu0 }
 0x17a   : > { %v1273_v49 = vpop.f32.mrf.mxu3  ;;  %v1185_v50 = vadd.f32 %v1184_v48, %v1096_v47  ;;  %v1098_v52 = vpop.f32.mrf.mxu1 }
 0x17b   : > { %v1099_v55 = vadd.f32 %v1098_v52, %v1009_v51 }
 0x17c   : > { %v1274_v53 = vadd.f32 %v1273_v49, %v1185_v50 }
 0x17e   : > { %v1419_v54 = vadd.f32 %v2308_v18, %v1274_v53 }
 0x180   : > { %1451 = vst [vmem:[%s2313_s21 + $0xc8] sm:$0xff] %v1419_v54 }
 0x181   : > { %v1187_v56 = vpop.f32.mrf.mxu2  ;;  %v1011_v59 = vpop.f32.mrf.mxu0 }
 0x182   : > { %v1276_v57 = vpop.f32.mrf.mxu3  ;;  %v1188_v58 = vadd.f32 %v1187_v56, %v1099_v55  ;;  %v1100_v60 = vpop.f32.mrf.mxu1 }
 0x183   : > { %v1101_v63 = vadd.f32 %v1100_v60, %v1011_v59 }
 0x184   : > { %v1277_v61 = vadd.f32 %v1276_v57, %v1188_v58 }
 0x186   : > { %v1420_v62 = vadd.f32 %v2308_v18, %v1277_v61 }
 0x188   : > { %1452 = vst [vmem:[%s2313_s21 + $0xd0] sm:$0xff] %v1420_v62 }
 0x189   : > { %v1189_v0 = vpop.f32.mrf.mxu2  ;;  %v1014_v3 = vpop.f32.mrf.mxu0 }
 0x18a   : > { %v1278_v1 = vpop.f32.mrf.mxu3  ;;  %v1190_v2 = vadd.f32 %v1189_v0, %v1101_v63  ;;  %v1103_v4 = vpop.f32.mrf.mxu1 }
 0x18b   : > { %v1104_v7 = vadd.f32 %v1103_v4, %v1014_v3 }
 0x18c   : > { %v1279_v5 = vadd.f32 %v1278_v1, %v1190_v2 }
 0x18e   : > { %v1421_v6 = vadd.f32 %v2308_v18, %v1279_v5 }
 0x190   : > { %1453 = vst [vmem:[%s2313_s21 + $0xd8] sm:$0xff] %v1421_v6 }
 0x191   : > { %v1192_v8 = vpop.f32.mrf.mxu2  ;;  %v1016_v11 = vpop.f32.mrf.mxu0 }
 0x192   : > { %v1281_v9 = vpop.f32.mrf.mxu3  ;;  %v1193_v10 = vadd.f32 %v1192_v8, %v1104_v7  ;;  %v1105_v12 = vpop.f32.mrf.mxu1 }
 0x193   : > { %v1106_v15 = vadd.f32 %v1105_v12, %v1016_v11 }
 0x194   : > { %v1282_v13 = vadd.f32 %v1281_v9, %v1193_v10 }
 0x196   : > { %v1422_v14 = vadd.f32 %v2308_v18, %v1282_v13 }
 0x198   : > { %1454 = vst [vmem:[%s2313_s21 + $0xe0] sm:$0xff] %v1422_v14 }
 0x199   : > { %v1194_v16 = vpop.f32.mrf.mxu2  ;;  %v1019_v20 = vpop.f32.mrf.mxu0 }
 0x19a   : > { %v1283_v17 = vpop.f32.mrf.mxu3  ;;  %v1195_v19 = vadd.f32 %v1194_v16, %v1106_v15  ;;  %v1108_v21 = vpop.f32.mrf.mxu1 }
 0x19b   : > { %v1109_v24 = vadd.f32 %v1108_v21, %v1019_v20 }
 0x19c   : > { %v1284_v22 = vadd.f32 %v1283_v17, %v1195_v19 }
 0x19e   : > { %v1423_v23 = vadd.f32 %v2308_v18, %v1284_v22 }
 0x1a0   : > { %1455 = vst [vmem:[%s2313_s21 + $0xe8] sm:$0xff] %v1423_v23 }
 0x1a1   : > { %v1197_v25 = vpop.f32.mrf.mxu2  ;;  %v1021_v29 = vpop.f32.mrf.mxu0 }
 0x1a2   : > { %v1286_v26 = vpop.f32.mrf.mxu3  ;;  %v1198_v27 = vadd.f32 %v1197_v25, %v1109_v24  ;;  %v1110_v30 = vpop.f32.mrf.mxu1 }
 0x1a3   : > { %v1111_v32 = vadd.f32 %v1110_v30, %v1021_v29 }
 0x1a4   : > { %v1287_v28 = vadd.f32 %v1286_v26, %v1198_v27 }
 0x1a6   : > { %v1424_v31 = vadd.f32 %v2308_v18, %v1287_v28 }
 0x1a8   : > { %1456 = vst [vmem:[%s2313_s21 + $0xf0] sm:$0xff] %v1424_v31 }
 0x1a9   : > { %v1199_v33 = vpop.f32.mrf.mxu2 }
 0x1aa   : > { %v1200_v34 = vadd.f32 %v1199_v33, %v1111_v32  ;;  %v1288_v35 = vpop.f32.mrf.mxu3 }
 0x1ac   : > { %v1289_v36 = vadd.f32 %v1288_v35, %v1200_v34 }
 0x1ae   : > { %v1425_v37 = vadd.f32 %v2308_v18, %v1289_v36 }
 0x1b0   : > { %1457 = vst [vmem:[%s2313_s21 + $0xf8] sm:$0xff] %v1425_v37 }
 0x1b1 PF: > { %s13_s14 = sadd.s32 1, %s2085_s14   ;;  %s2448_s12 = smov %s2081_s13 }
 0x1b2   : > { %p10_p5 = scmp.ge.s32.totalorder %s13_s14, 4   ;;  %s2449_s13 = smov %s2451_s15 }
 0x1b4   :  { %12 = sbr.rel (!%p10_p5) target bundleno = 2 (0x2), region = 73 }

// kernel: gcn_forward.2
= control target key start
LH: loop header
LB: loop body
LE: loop exit
PB: predicated region body
PF: predicated region fallthrough
CT: control target
= control target key end

     0   :  { %s2531_s15 = smov 0   ;;  %s2533_s16 = smov 0   ;;  %s2948_s0 = inlined_call_operand.vmem [shape: bf16[512,512], index: 0, kind: input, shape index: {}]   ;;  %s2949_s1 = inlined_call_operand.vmem [shape: bf16[512,128], index: 1, kind: input, shape index: {}]   ;;  %s2950_s2 = inlined_call_operand.vmem [shape: f32[1,128], index: 2, kind: input, shape index: {}]   ;;  %s2951_s3 = inlined_call_operand.vmem [shape: bf16[128,128], index: 3, kind: input, shape index: {}]   ;;  %s2952_s4 = inlined_call_operand.vmem [shape: bf16[512,128], index: 4, kind: output, shape index: {}]  }
   0x1   :  { %s2535_s17 = smov 0  }
   0x2 LB: > { %s26_s18 = sadd.s32 1, %s2500_s16  ;;  %p1809_p0 = scmp.ge.s32.totalorder %s2504_s17, 1  ;;  %s2504_s17 = sphi %s2535_s17, %s14_s17   ;;  %s2500_s16 = sphi %s2533_s16, %s2954_s16   ;;  %s2496_s15 = sphi %s2531_s15, %s2953_s15  }
   0x3   : > { %p28_p1 = scmp.ge.s32.totalorder %s26_s18, 2  ;;  %p194_p2 = scmp.lt.s32.totalorder %s2504_s17, 3 }
   0x5   : > { %s2956_s18 = smov (%p28_p1, %s26_s18), 0  ;;  %p195_p3 = pnand %p1809_p0, %p194_p2 }
   0x6   : > { %s1810_s25 = sshll.u32 (!%p195_p3), %s2496_s15, 5 }
   0x7   : > { %198 = sbr.rel (%p195_p3) target bundleno = 636 (0x27c), region = 36  ;;  %p232_p4 = scmp.lt.s32.totalorder (!%p195_p3), %s1810_s25, 63 }
   0xc   : > { %v2305_v0 = vld [vmem:[%s2949_s1 + $0x38] sm:$0xff]  ;;  %v2304_v1 = vld [vmem:[%s2949_s1 + $0x30] sm:$0xff]  ;;  %v2303_v2 = vld [vmem:[%s2949_s1 + $0x28] sm:$0xff]  ;;  %s2958_s25 = smov (!%p232_p4, %s1810_s25), 63 }
   0xd   : > { %2433 = vmatpush.bf16.msra.mxu1 %v2305_v0  ;;  %2434 = vmatpush.bf16.msra.mxu2 %v2305_v0  ;;  %v2302_v3 = vld [vmem:[%s2949_s1 + $0x20] sm:$0xff]  ;;  %v2301_v4 = vld [vmem:[%s2949_s1 + $0x18] sm:$0xff]  ;;  %v2300_v5 = vld [vmem:[%s2949_s1 + $0x10] sm:$0xff]  ;;  %s2233_s6 = sshll.u32 %s2958_s25, 4 }
   0xe   : > { %2435 = vmatpush.bf16.msra.mxu3 %v2305_v0  ;;  %962 = vmatpush.bf16.msra.mxu0 %v2305_v0  ;;  %v2299_v6 = vld [vmem:[%s2949_s1 + $0x8] sm:$0xff]  ;;  %s2579_s11 = scalar_lea.vmem %s2948_s0, %s2233_s6  ;;  %v2298_v7 = vld [vmem:[%s2949_s1] sm:$0xff]  ;;  %v2321_v14 = vld [vmem:[%s2949_s1 + $0xb8] sm:$0xff] }
   0xf   : > { %v1881_v8 = vld [vmem:[%s2579_s11 + $0x80] sm:$0xf]  ;;  %v2252_v9 = vld [vmem:[%s2579_s11 + $0x8c] sm:$0xf0]  ;;  %v2329_v15 = vld [vmem:[%s2949_s1 + $0xf8] sm:$0xff] }
  0x10   : > { %v1945_v10 = vld [vmem:[%s2579_s11 + $0x100] sm:$0xf]  ;;  %v2268_v11 = vld [vmem:[%s2579_s11 + $0x10c] sm:$0xf0]  ;;  %v2313_v16 = vld [vmem:[%s2949_s1 + $0x78] sm:$0xff]  ;;  %v1882_v17 = vor.u32 %v2252_v9, %v1881_v8 }
  0x11   : > { %2436 = vmatpush.bf16.msra.mxu1 %v2304_v1  ;;  %2437 = vmatpush.bf16.msra.mxu2 %v2304_v1  ;;  %v2009_v12 = vld [vmem:[%s2579_s11 + $0x180] sm:$0xf]  ;;  %v2284_v13 = vld [vmem:[%s2579_s11 + $0x18c] sm:$0xf0]  ;;  %v1946_v18 = vor.u32 %v2268_v11, %v1945_v10  ;;  %v2319_v23 = vld [vmem:[%s2949_s1 + $0xa8] sm:$0xff] }
  0x12   : > { %2438 = vmatpush.bf16.msra.mxu3 %v2304_v1  ;;  %963 = vmatpush.bf16.msra.mxu0 %v2304_v1  ;;  %v2010_v19 = vor.u32 %v2284_v13, %v2009_v12  ;;  %v2320_v20 = vld [vmem:[%s2949_s1 + $0xb0] sm:$0xff]  ;;  %v2327_v24 = vld [vmem:[%s2949_s1 + $0xe8] sm:$0xff]  ;;  %v2318_v26 = vld [vmem:[%s2949_s1 + $0xa0] sm:$0xff] }
  0x13   : > { %v2328_v21 = vld [vmem:[%s2949_s1 + $0xf0] sm:$0xff]  ;;  %v2311_v25 = vld [vmem:[%s2949_s1 + $0x68] sm:$0xff]  ;;  %v2326_v27 = vld [vmem:[%s2949_s1 + $0xe0] sm:$0xff] }
  0x14   : > { %v2312_v22 = vld [vmem:[%s2949_s1 + $0x70] sm:$0xff]  ;;  %v2310_v28 = vld [vmem:[%s2949_s1 + $0x60] sm:$0xff]  ;;  %v2317_v35 = vld [vmem:[%s2949_s1 + $0x98] sm:$0xff] }
  0x15   : > { %2439 = vmatpush.bf16.msra.mxu1 %v2303_v2  ;;  %2440 = vmatpush.bf16.msra.mxu2 %v2303_v2  ;;  %v1897_v29 = vld [vmem:[%s2579_s11 + $0xa0] sm:$0xf]  ;;  %v2256_v30 = vld [vmem:[%s2579_s11 + $0xac] sm:$0xf0]  ;;  %v2325_v36 = vld [vmem:[%s2949_s1 + $0xd8] sm:$0xff] }
  0x16   : > { %2441 = vmatpush.bf16.msra.mxu3 %v2303_v2  ;;  %964 = vmatpush.bf16.msra.mxu0 %v2303_v2  ;;  %v1961_v31 = vld [vmem:[%s2579_s11 + $0x120] sm:$0xf]  ;;  %v2272_v32 = vld [vmem:[%s2579_s11 + $0x12c] sm:$0xf0]  ;;  %v2309_v37 = vld [vmem:[%s2949_s1 + $0x58] sm:$0xff]  ;;  %v1898_v38 = vor.u32 %v2256_v30, %v1897_v29 }
  0x17   : > { %v2025_v33 = vld [vmem:[%s2579_s11 + $0x1a0] sm:$0xf]  ;;  %v2288_v34 = vld [vmem:[%s2579_s11 + $0x1ac] sm:$0xf0]  ;;  %v1962_v39 = vor.u32 %v2272_v32, %v1961_v31  ;;  %v2315_v44 = vld [vmem:[%s2949_s1 + $0x88] sm:$0xff] }
  0x18   : > { %v2026_v40 = vor.u32 %v2288_v34, %v2025_v33  ;;  %v2316_v41 = vld [vmem:[%s2949_s1 + $0x90] sm:$0xff]  ;;  %v1817_v45 = vld [vmem:[%s2579_s11] sm:$0xf]  ;;  %v2323_v46 = vld [vmem:[%s2949_s1 + $0xc8] sm:$0xff] }
  0x19   : > { %2442 = vmatpush.bf16.msra.mxu1 %v2302_v3  ;;  %2443 = vmatpush.bf16.msra.mxu2 %v2302_v3  ;;  %v2324_v42 = vld [vmem:[%s2949_s1 + $0xd0] sm:$0xff]  ;;  %v2307_v47 = vld [vmem:[%s2949_s1 + $0x48] sm:$0xff]  ;;  %v2314_v50 = vld [vmem:[%s2949_s1 + $0x80] sm:$0xff] }
  0x1a   : > { %2444 = vmatpush.bf16.msra.mxu3 %v2302_v3  ;;  %965 = vmatpush.bf16.msra.mxu0 %v2302_v3  ;;  %v2308_v43 = vld [vmem:[%s2949_s1 + $0x50] sm:$0xff]  ;;  %v2322_v51 = vld [vmem:[%s2949_s1 + $0xc0] sm:$0xff]  ;;  %v2239_v29 = vld [vmem:[%s2579_s11 + $0x2c] sm:$0xf] }
  0x1b   : > { %v2236_v48 = vld [vmem:[%s2579_s11 + $0xc] sm:$0xf0]  ;;  %v2306_v52 = vld [vmem:[%s2949_s1 + $0x40] sm:$0xff]  ;;  %v1843_v30 = vld [vmem:[%s2579_s11 + $0x38] sm:$0xf0] }
  0x1c   : > { %v1818_v49 = vor.u32 %v2236_v48, %v1817_v45  ;;  %v1913_v53 = vld [vmem:[%s2579_s11 + $0xc0] sm:$0xf]  ;;  %v2260_v54 = vld [vmem:[%s2579_s11 + $0xcc] sm:$0xf0]  ;;  %v2234_v13 = vld [vmem:[%s2579_s11 + $0x4] sm:$0xf]  ;;  %v1846_v33 = vor.u32 %v2239_v29, %v1843_v30 }
  0x1d   : > { %2445 = vmatpush.bf16.msra.mxu1 %v2301_v4  ;;  %2446 = vmatpush.bf16.msra.mxu2 %v2301_v4  ;;  %v1977_v55 = vld [vmem:[%s2579_s11 + $0x140] sm:$0xf]  ;;  %v2276_v56 = vld [vmem:[%s2579_s11 + $0x14c] sm:$0xf0]  ;;  %v1914_v59 = vor.u32 %v2260_v54, %v1913_v53  ;;  %v2242_v34 = vld [vmem:[%s2579_s11 + $0x44] sm:$0xf] }
  0x1e   : > { %2447 = vmatpush.bf16.msra.mxu3 %v2301_v4  ;;  %966 = vmatpush.bf16.msra.mxu0 %v2301_v4  ;;  %v2041_v57 = vld [vmem:[%s2579_s11 + $0x1c0] sm:$0xf]  ;;  %v2292_v58 = vld [vmem:[%s2579_s11 + $0x1cc] sm:$0xf0]  ;;  %v1978_v60 = vor.u32 %v2276_v56, %v1977_v55  ;;  %v1873_v45 = vld [vmem:[%s2579_s11 + $0x68] sm:$0xf] }
  0x1f   : > { %v2042_v61 = vor.u32 %v2292_v58, %v2041_v57  ;;  %v1833_v62 = vld [vmem:[%s2579_s11 + $0x20] sm:$0xf]  ;;  %v2240_v63 = vld [vmem:[%s2579_s11 + $0x2c] sm:$0xf0]  ;;  %v1875_v48 = vld [vmem:[%s2579_s11 + $0x78] sm:$0xf0] }
  0x20   : > { %v1834_v0 = vor.u32 %v2240_v63, %v1833_v62  ;;  %v1929_v1 = vld [vmem:[%s2579_s11 + $0xe0] sm:$0xf]  ;;  %v2264_v2 = vld [vmem:[%s2579_s11 + $0xec] sm:$0xf0]  ;;  %v2250_v53 = vld [vmem:[%s2579_s11 + $0x84] sm:$0xf] }
  0x21   : > { %2448 = vmatpush.bf16.msra.mxu1 %v2300_v5  ;;  %2449 = vmatpush.bf16.msra.mxu2 %v2300_v5  ;;  %v1993_v3 = vld [vmem:[%s2579_s11 + $0x160] sm:$0xf]  ;;  %v2280_v4 = vld [vmem:[%s2579_s11 + $0x16c] sm:$0xf0]  ;;  %v1883_v54 = vld [vmem:[%s2579_s11 + $0x90] sm:$0xf0] }
  0x22   : > { %2450 = vmatpush.bf16.msra.mxu3 %v2300_v5  ;;  %967 = vmatpush.bf16.msra.mxu0 %v2300_v5  ;;  %v2057_v5 = vld [vmem:[%s2579_s11 + $0x1e0] sm:$0xf]  ;;  %v1994_v8 = vor.u32 %v2280_v4, %v1993_v3  ;;  %v2244_v11 = vld [vmem:[%s2579_s11 + $0x4c] sm:$0xf0]  ;;  %v1889_v55 = vld [vmem:[%s2579_s11 + $0x88] sm:$0xf] }
  0x23   : > { %v1849_v10 = vld [vmem:[%s2579_s11 + $0x40] sm:$0xf]  ;;  %v2253_v56 = vld [vmem:[%s2579_s11 + $0x94] sm:$0xf0]  ;;  %v2251_v57 = vld [vmem:[%s2579_s11 + $0x8c] sm:$0xf] }
  0x24   : > { %v1850_v12 = vor.u32 %v2244_v11, %v1849_v10  ;;  %v1891_v58 = vld [vmem:[%s2579_s11 + $0x98] sm:$0xf0]  ;;  %v2336_v63 = vld [vmem:[%s2951_s3 + $0x30] sm:$0xff]  ;;  %v2335_v3 = vld [vmem:[%s2951_s3 + $0x28] sm:$0xff] }
  0x25   : > { %2451 = vmatpush.bf16.msra.mxu1 %v2299_v6  ;;  %2452 = vmatpush.bf16.msra.mxu2 %v2299_v6  ;;  %v1894_v62 = vor.u32 %v2251_v57, %v1891_v58  ;;  %v2254_v4 = vld [vmem:[%s2579_s11 + $0xa4] sm:$0xf]  ;;  %v1953_v57 = vld [vmem:[%s2579_s11 + $0x108] sm:$0xf]  ;;  %v2269_v58 = vld [vmem:[%s2579_s11 + $0x114] sm:$0xf0] }
  0x26   : > { %2453 = vmatpush.bf16.msra.mxu3 %v2299_v6  ;;  %968 = vmatpush.bf16.msra.mxu0 %v2299_v6  ;;  %v2296_v6 = vld [vmem:[%s2579_s11 + $0x1ec] sm:$0xf0] }
  0x27   : > { %v2058_v9 = vor.u32 %v2296_v6, %v2057_v5  ;;  %v1899_v5 = vld [vmem:[%s2579_s11 + $0xb0] sm:$0xf0]  ;;  %v1905_v6 = vld [vmem:[%s2579_s11 + $0xa8] sm:$0xf] }
  0x29   : > { %2454 = vmatpush.bf16.msra.mxu1 %v2298_v7  ;;  %2455 = vmatpush.bf16.msra.mxu2 %v2298_v7 }
  0x2a   : > { %2456 = vmatpush.bf16.msra.mxu3 %v2298_v7  ;;  %969 = vmatpush.bf16.msra.mxu0 %v2298_v7  ;;  %v1930_v7 = vor.u32 %v2264_v2, %v1929_v1 }
  0x2c   : > { %990 = vmatmul.bf16.vlgmr.msra.gmra.mxu1 %v1882_v17  ;;  %1010 = vmatmul.bf16.vlgmr.msra.gmra.mxu2 %v1946_v18  ;;  %v2235_v17 = vld [vmem:[%s2579_s11 + $0xc] sm:$0xf]  ;;  %v1827_v18 = vld [vmem:[%s2579_s11 + $0x18] sm:$0xf0] }
  0x2d   : > { %1140 = vmatpush.bf16.msrb.mxu2 %v2321_v14  ;;  %1051 = vmatpush.bf16.msrb.mxu1 %v2313_v16  ;;  %v1819_v14 = vld [vmem:[%s2579_s11 + $0x10] sm:$0xf0]  ;;  %v2237_v16 = vld [vmem:[%s2579_s11 + $0x14] sm:$0xf0] }
  0x2e   : > { %1229 = vmatpush.bf16.msrb.mxu3 %v2329_v15  ;;  %970 = vmatmul.bf16.vlgmr.msra.gmra.mxu0 %v1818_v49  ;;  %v1825_v15 = vld [vmem:[%s2579_s11 + $0x8] sm:$0xf] }
  0x2f   : > { %1030 = vmatmul.bf16.vlgmr.msra.gmra.mxu3 %v2010_v19  ;;  %v1822_v19 = vor.u32 %v2234_v13, %v1819_v14 }
  0x31   : > { %1141 = vmatpush.bf16.msrb.mxu2 %v2320_v20  ;;  %1052 = vmatpush.bf16.msrb.mxu1 %v2312_v22  ;;  %v1826_v20 = vor.u32 %v2237_v16, %v1825_v15  ;;  %v1865_v22 = vld [vmem:[%s2579_s11 + $0x60] sm:$0xf] }
  0x32   : > { %1230 = vmatpush.bf16.msrb.mxu3 %v2328_v21  ;;  %v1830_v21 = vor.u32 %v2235_v17, %v1827_v18  ;;  %v2334_v16 = vld [vmem:[%s2951_s3 + $0x20] sm:$0xff] }
  0x35   : > { %1142 = vmatpush.bf16.msrb.mxu2 %v2319_v23  ;;  %1053 = vmatpush.bf16.msrb.mxu1 %v2311_v25  ;;  %v2248_v23 = vld [vmem:[%s2579_s11 + $0x6c] sm:$0xf0]  ;;  %v2238_v25 = vld [vmem:[%s2579_s11 + $0x24] sm:$0xf] }
  0x36   : > { %1231 = vmatpush.bf16.msrb.mxu3 %v2327_v24  ;;  %v1866_v24 = vor.u32 %v2248_v23, %v1865_v22  ;;  %v1915_v22 = vld [vmem:[%s2579_s11 + $0xd0] sm:$0xf0]  ;;  %v1921_v23 = vld [vmem:[%s2579_s11 + $0xc8] sm:$0xf] }
  0x39   : > { %1143 = vmatpush.bf16.msrb.mxu2 %v2318_v26  ;;  %1054 = vmatpush.bf16.msrb.mxu1 %v2310_v28  ;;  %v1835_v26 = vld [vmem:[%s2579_s11 + $0x30] sm:$0xf0]  ;;  %v2241_v28 = vld [vmem:[%s2579_s11 + $0x34] sm:$0xf0] }
  0x3a   : > { %1232 = vmatpush.bf16.msrb.mxu3 %v2326_v27  ;;  %v1841_v27 = vld [vmem:[%s2579_s11 + $0x28] sm:$0xf]  ;;  %v1838_v31 = vor.u32 %v2238_v25, %v1835_v26  ;;  %v2259_v25 = vld [vmem:[%s2579_s11 + $0xcc] sm:$0xf]  ;;  %v1923_v26 = vld [vmem:[%s2579_s11 + $0xd8] sm:$0xf0] }
  0x3b   : > { %v1842_v32 = vor.u32 %v2241_v28, %v1841_v27 }
  0x3c   : > { %995 = vmatmul.bf16.gmra.mxu1 %v1898_v38  ;;  %1015 = vmatmul.bf16.gmra.mxu2 %v1962_v39  ;;  %v2243_v38 = vld [vmem:[%s2579_s11 + $0x4c] sm:$0xf]  ;;  %v1859_v39 = vld [vmem:[%s2579_s11 + $0x58] sm:$0xf0] }
  0x3d   : > { %1144 = vmatpush.bf16.msrb.mxu2 %v2317_v35  ;;  %1055 = vmatpush.bf16.msrb.mxu1 %v2309_v37  ;;  %v1851_v35 = vld [vmem:[%s2579_s11 + $0x50] sm:$0xf0]  ;;  %v2245_v37 = vld [vmem:[%s2579_s11 + $0x54] sm:$0xf0] }
  0x3e   : > { %1233 = vmatpush.bf16.msrb.mxu3 %v2325_v36  ;;  %975 = vmatmul.bf16.gmra.mxu0 %v1834_v0  ;;  %v1857_v36 = vld [vmem:[%s2579_s11 + $0x48] sm:$0xf] }
  0x3f   : > { %1035 = vmatmul.bf16.gmra.mxu3 %v2026_v40  ;;  %v1854_v40 = vor.u32 %v2242_v34, %v1851_v35 }
  0x41   : > { %1145 = vmatpush.bf16.msrb.mxu2 %v2316_v41  ;;  %1056 = vmatpush.bf16.msrb.mxu1 %v2308_v43  ;;  %v1858_v41 = vor.u32 %v2245_v37, %v1857_v36  ;;  %v2246_v43 = vld [vmem:[%s2579_s11 + $0x64] sm:$0xf] }
  0x42   : > { %1234 = vmatpush.bf16.msrb.mxu3 %v2324_v42  ;;  %v1862_v42 = vor.u32 %v2243_v38, %v1859_v39  ;;  %v2262_v37 = vld [vmem:[%s2579_s11 + $0xe4] sm:$0xf]  ;;  %v1931_v38 = vld [vmem:[%s2579_s11 + $0xf0] sm:$0xf0]  ;;  %v1937_v39 = vld [vmem:[%s2579_s11 + $0xe8] sm:$0xf] }
  0x45   : > { %1146 = vmatpush.bf16.msrb.mxu2 %v2315_v44  ;;  %1057 = vmatpush.bf16.msrb.mxu1 %v2307_v47  ;;  %v1867_v44 = vld [vmem:[%s2579_s11 + $0x70] sm:$0xf0]  ;;  %v2247_v47 = vld [vmem:[%s2579_s11 + $0x6c] sm:$0xf] }
  0x46   : > { %1235 = vmatpush.bf16.msrb.mxu3 %v2323_v46  ;;  %v2249_v46 = vld [vmem:[%s2579_s11 + $0x74] sm:$0xf0]  ;;  %v1870_v49 = vor.u32 %v2246_v43, %v1867_v44  ;;  %v2331_v43 = vld [vmem:[%s2951_s3 + $0x8] sm:$0xff] }
  0x49   : > { %1147 = vmatpush.bf16.msrb.mxu2 %v2314_v50  ;;  %1058 = vmatpush.bf16.msrb.mxu1 %v2306_v52  ;;  %v1874_v50 = vor.u32 %v2249_v46, %v1873_v45  ;;  %v2337_v52 = vld [vmem:[%s2951_s3 + $0x38] sm:$0xff]  ;;  %v1934_v46 = vor.u32 %v2262_v37, %v1931_v38 }
  0x4a   : > { %1236 = vmatpush.bf16.msrb.mxu3 %v2322_v51  ;;  %v1878_v51 = vor.u32 %v2247_v47, %v1875_v48  ;;  %1565 = vmatpush.bf16.msrb.mxu0 %v2337_v52 }
  0x4c   : > { %1000 = vmatmul.bf16.gmra.mxu1 %v1914_v59  ;;  %1020 = vmatmul.bf16.gmra.mxu2 %v1978_v60  ;;  %v1886_v59 = vor.u32 %v2250_v53, %v1883_v54  ;;  %v1890_v60 = vor.u32 %v2253_v56, %v1889_v55  ;;  %v2266_v55 = vld [vmem:[%s2579_s11 + $0x104] sm:$0xf]  ;;  %v1947_v56 = vld [vmem:[%s2579_s11 + $0x110] sm:$0xf0] }
  0x4e   : > { %980 = vmatmul.bf16.gmra.mxu0 %v1850_v12  ;;  %v1902_v12 = vor.u32 %v2254_v4, %v1899_v5  ;;  %v1954_v4 = vor.u32 %v2269_v58, %v1953_v57 }
  0x4f   : > { %1040 = vmatmul.bf16.gmra.mxu3 %v2042_v61  ;;  %1566 = vmatpush.bf16.msrb.mxu0 %v2336_v63 }
  0x53   : > { %1567 = vmatpush.bf16.msrb.mxu0 %v2335_v3  ;;  %v1950_v3 = vor.u32 %v2266_v55, %v1947_v56 }
  0x57   : > { %1568 = vmatpush.bf16.msrb.mxu0 %v2334_v16 }
  0x5c   : > { %1005 = vmatmul.bf16.gmra.mxu1 %v1930_v7  ;;  %1025 = vmatmul.bf16.gmra.mxu2 %v1994_v8  ;;  %v2257_v7 = vld [vmem:[%s2579_s11 + $0xb4] sm:$0xf0]  ;;  %v2255_v8 = vld [vmem:[%s2579_s11 + $0xac] sm:$0xf] }
  0x5d   : > { %v1906_v13 = vor.u32 %v2257_v7, %v1905_v6 }
  0x5e   : > { %985 = vmatmul.bf16.gmra.mxu0 %v1866_v24  ;;  %v2261_v24 = vld [vmem:[%s2579_s11 + $0xd4] sm:$0xf0] }
  0x5f   : > { %1045 = vmatmul.bf16.gmra.mxu3 %v2058_v9  ;;  %v1907_v9 = vld [vmem:[%s2579_s11 + $0xb8] sm:$0xf0]  ;;  %v1922_v30 = vor.u32 %v2261_v24, %v1921_v23  ;;  %v2273_v23 = vld [vmem:[%s2579_s11 + $0x134] sm:$0xf0] }
  0x60   : > { %v1910_v15 = vor.u32 %v2255_v8, %v1907_v9 }
  0x6c   : > { %1059 = vmatmul.bf16.vlgmr.msrb.gmra.mxu1 %v1822_v19  ;;  %1148 = vmatmul.bf16.vlgmr.msrb.gmra.mxu2 %v1826_v20  ;;  %v2333_v20 = vld [vmem:[%s2951_s3 + $0x18] sm:$0xff] }
  0x6d   : > { %1569 = vmatpush.bf16.msrb.mxu0 %v2333_v20  ;;  %v2270_v20 = vld [vmem:[%s2579_s11 + $0x124] sm:$0xf] }
  0x6f   : > { %1237 = vmatmul.bf16.vlgmr.msrb.gmra.mxu3 %v1830_v21  ;;  %v2258_v21 = vld [vmem:[%s2579_s11 + $0xc4] sm:$0xf] }
  0x70   : > { %v1918_v29 = vor.u32 %v2258_v21, %v1915_v22  ;;  %v1963_v21 = vld [vmem:[%s2579_s11 + $0x130] sm:$0xf0]  ;;  %v1969_v22 = vld [vmem:[%s2579_s11 + $0x128] sm:$0xf] }
  0x71   : > { %v1966_v38 = vor.u32 %v2270_v20, %v1963_v21 }
  0x7c   : > { %1064 = vmatmul.bf16.gmra.mxu1 %v1838_v31  ;;  %1153 = vmatmul.bf16.gmra.mxu2 %v1842_v32  ;;  %v1926_v32 = vor.u32 %v2259_v25, %v1923_v26  ;;  %v2821_v25 = vld [vmem:[%s2950_s2] ss:$0 sm:$0xff] }
  0x7f   : > { %1242 = vmatmul.bf16.gmra.mxu3 %v1846_v33  ;;  %v2332_v33 = vld [vmem:[%s2951_s3 + $0x10] sm:$0xff] }
  0x80   : > { %1570 = vmatpush.bf16.msrb.mxu0 %v2332_v33 }
  0x84   : > { %1571 = vmatpush.bf16.msrb.mxu0 %v2331_v43 }
  0x8c   : > { %1069 = vmatmul.bf16.gmra.mxu1 %v1854_v40  ;;  %1158 = vmatmul.bf16.gmra.mxu2 %v1858_v41  ;;  %v2265_v40 = vld [vmem:[%s2579_s11 + $0xf4] sm:$0xf0]  ;;  %v2263_v41 = vld [vmem:[%s2579_s11 + $0xec] sm:$0xf] }
  0x8d   : > { %v1938_v47 = vor.u32 %v2265_v40, %v1937_v39  ;;  %v1970_v39 = vor.u32 %v2273_v23, %v1969_v22 }
  0x8f   : > { %1247 = vmatmul.bf16.gmra.mxu3 %v1862_v42  ;;  %v1939_v42 = vld [vmem:[%s2579_s11 + $0xf8] sm:$0xf0] }
  0x9c   : > { %1074 = vmatmul.bf16.gmra.mxu1 %v1870_v49  ;;  %1163 = vmatmul.bf16.gmra.mxu2 %v1874_v50  ;;  %v1942_v49 = vor.u32 %v2263_v41, %v1939_v42  ;;  %v2330_v50 = vld [vmem:[%s2951_s3] sm:$0xff] }
  0x9d   : > { %1572 = vmatpush.bf16.msrb.mxu0 %v2330_v50 }
  0x9f   : > { %1252 = vmatmul.bf16.gmra.mxu3 %v1878_v51 }
  0xa9   : > { %v2721_v61 = vpop.f32.mrf.mxu1 }
  0xab   : > { %v971_v52 = vpop.f32.mrf.mxu0 }
  0xac   : > { %1079 = vmatmul.bf16.gmra.mxu1 %v1886_v59  ;;  %1168 = vmatmul.bf16.gmra.mxu2 %v1890_v60  ;;  %v2267_v59 = vld [vmem:[%s2579_s11 + $0x10c] sm:$0xf]  ;;  %v1955_v60 = vld [vmem:[%s2579_s11 + $0x118] sm:$0xf0] }
  0xad   : > { %v1958_v6 = vor.u32 %v2267_v59, %v1955_v60  ;;  %v2274_v60 = vld [vmem:[%s2579_s11 + $0x144] sm:$0xf] }
  0xaf   : > { %1257 = vmatmul.bf16.gmra.mxu3 %v1894_v62  ;;  %v2726_v0 = vpop.f32.mrf.mxu2 }
  0xb1   : > { %v2730_v2 = vpop.f32.mrf.mxu1 }
  0xb2   : > { %v2728_v1 = vpop.f32.mrf.mxu3 }
  0xb3   : > { %v973_v7 = vpop.f32.mrf.mxu0 }
  0xb7   : > { %v2741_v10 = vpop.f32.mrf.mxu2 }
  0xb9   : > { %v2745_v14 = vpop.f32.mrf.mxu1 }
  0xba   : > { %v2743_v11 = vpop.f32.mrf.mxu3 }
  0xbb   : > { %v976_v16 = vpop.f32.mrf.mxu0 }
  0xbc   : > { %1084 = vmatmul.bf16.gmra.mxu1 %v1902_v12  ;;  %1173 = vmatmul.bf16.gmra.mxu2 %v1906_v13 }
  0xbf   : > { %1262 = vmatmul.bf16.gmra.mxu3 %v1910_v15  ;;  %v2750_v17 = vpop.f32.mrf.mxu2 }
  0xc1   : > { %v2754_v19 = vpop.f32.mrf.mxu1 }
  0xc2   : > { %v2752_v18 = vpop.f32.mrf.mxu3 }
  0xc7   : > { %v2765_v27 = vpop.f32.mrf.mxu2 }
  0xc9   : > { %v2769_v31 = vpop.f32.mrf.mxu1 }
  0xca   : > { %v2767_v28 = vpop.f32.mrf.mxu3 }
  0xcc   : > { %1089 = vmatmul.bf16.gmra.mxu1 %v1918_v29  ;;  %1178 = vmatmul.bf16.gmra.mxu2 %v1922_v30  ;;  %v2271_v29 = vld [vmem:[%s2579_s11 + $0x12c] sm:$0xf]  ;;  %v1971_v30 = vld [vmem:[%s2579_s11 + $0x138] sm:$0xf0] }
  0xcd   : > { %v1974_v41 = vor.u32 %v2271_v29, %v1971_v30 }
  0xcf   : > { %1267 = vmatmul.bf16.gmra.mxu3 %v1926_v32  ;;  %v2774_v34 = vpop.f32.mrf.mxu2 }
  0xd1   : > { %v2778_v36 = vpop.f32.mrf.mxu1 }
  0xd2   : > { %v2776_v35 = vpop.f32.mrf.mxu3 }
  0xd7   : > { %v2789_v44 = vpop.f32.mrf.mxu2 }
  0xd9   : > { %v2793_v48 = vpop.f32.mrf.mxu1 }
  0xda   : > { %v2791_v45 = vpop.f32.mrf.mxu3 }
  0xdc   : > { %1094 = vmatmul.bf16.gmra.mxu1 %v1934_v46  ;;  %1183 = vmatmul.bf16.gmra.mxu2 %v1938_v47  ;;  %v978_v47 = vpop.f32.mrf.mxu0 }
  0xdf   : > { %1272 = vmatmul.bf16.gmra.mxu3 %v1942_v49  ;;  %v2798_v51 = vpop.f32.mrf.mxu2 }
  0xe1   : > { %v2802_v54 = vpop.f32.mrf.mxu1 }
  0xe2   : > { %v2800_v53 = vpop.f32.mrf.mxu3 }
  0xe7   : > { %v2810_v62 = vpop.f32.mrf.mxu2 }
  0xe9   : > { %v1060_v5 = vpop.f32.mrf.mxu1 }
  0xea   : > { %v2812_v63 = vpop.f32.mrf.mxu3  ;;  %v1061_v8 = vadd.f32 %v1060_v5, %v971_v52  ;;  %v2277_v5 = vld [vmem:[%s2579_s11 + $0x154] sm:$0xf0] }
  0xec   : > { %1099 = vmatmul.bf16.gmra.mxu1 %v1950_v3  ;;  %1188 = vmatmul.bf16.gmra.mxu2 %v1954_v4  ;;  %v1979_v3 = vld [vmem:[%s2579_s11 + $0x150] sm:$0xf0]  ;;  %v1985_v4 = vld [vmem:[%s2579_s11 + $0x148] sm:$0xf] }
  0xed   : > { %v1982_v21 = vor.u32 %v2274_v60, %v1979_v3 }
  0xef   : > { %1277 = vmatmul.bf16.gmra.mxu3 %v1958_v6  ;;  %v1149_v9 = vpop.f32.mrf.mxu2 }
  0xf0   : > { %v1150_v15 = vadd.f32 %v1149_v9, %v1061_v8  ;;  %v2275_v8 = vld [vmem:[%s2579_s11 + $0x14c] sm:$0xf]  ;;  %v1987_v9 = vld [vmem:[%s2579_s11 + $0x158] sm:$0xf0] }
  0xf1   : > { %v1062_v13 = vpop.f32.mrf.mxu1  ;;  %v1990_v23 = vor.u32 %v2275_v8, %v1987_v9 }
  0xf2   : > { %v1238_v12 = vpop.f32.mrf.mxu3  ;;  %v1063_v26 = vadd.f32 %v1062_v13, %v973_v7 }
  0xf3   : > { %v1239_v24 = vadd.f32 %v1238_v12, %v1150_v15  ;;  %v981_v12 = vpop.f32.mrf.mxu0 }
  0xf5   : > { %v1421_v42 = vadd.f32 %v2821_v25, %v1239_v24 }
  0xf7   : > { %v1151_v32 = vpop.f32.mrf.mxu2  ;;  %v1453_v49 = vmax.f32 %v1421_v42, 0.0 }
  0xf8   : > { %v1152_v33 = vadd.f32 %v1151_v32, %v1063_v26 }
  0xf9   : > { %v1065_v40 = vpop.f32.mrf.mxu1 }
  0xfa   : > { %v1240_v37 = vpop.f32.mrf.mxu3  ;;  %v1066_v52 = vadd.f32 %v1065_v40, %v976_v16  ;;  %v1986_v16 = vor.u32 %v2277_v5, %v1985_v4 }
  0xfb   : > { %v1241_v43 = vadd.f32 %v1240_v37, %v1152_v33  ;;  %v983_v40 = vpop.f32.mrf.mxu0 }
  0xfc   : > { %1104 = vmatmul.bf16.gmra.mxu1 %v1966_v38  ;;  %1193 = vmatmul.bf16.gmra.mxu2 %v1970_v39 }
  0xfd   : > { %v1422_v46 = vadd.f32 %v2821_v25, %v1241_v43  ;;  %v2278_v43 = vld [vmem:[%s2579_s11 + $0x164] sm:$0xf] }
  0xff   : > { %1282 = vmatmul.bf16.gmra.mxu3 %v1974_v41  ;;  %v1454_v50 = vmax.f32 %v1422_v46, 0.0  ;;  %v1154_v55 = vpop.f32.mrf.mxu2  ;;  %v1995_v46 = vld [vmem:[%s2579_s11 + $0x170] sm:$0xf0] }
 0x100   : > { %v1155_v59 = vadd.f32 %v1154_v55, %v1066_v52  ;;  %v2279_v55 = vld [vmem:[%s2579_s11 + $0x16c] sm:$0xf]  ;;  %v1998_v60 = vor.u32 %v2278_v43, %v1995_v46 }
 0x101   : > { %v1485_v57 = vpack.c.bf16 %v1454_v50, %v1453_v49  ;;  %v1067_v58 = vpop.f32.mrf.mxu1  ;;  %v2281_v49 = vld [vmem:[%s2579_s11 + $0x174] sm:$0xf0] }
 0x102   : > { %v1243_v56 = vpop.f32.mrf.mxu3  ;;  %v1068_v7 = vadd.f32 %v1067_v58, %v978_v47  ;;  %v2001_v47 = vld [vmem:[%s2579_s11 + $0x168] sm:$0xf] }
 0x103   : > { %1573 = vmatmul.bf16.vlgmr.msrb.gmra.mxu0 %v1485_v57  ;;  %v1244_v6 = vadd.f32 %v1243_v56, %v1155_v59  ;;  %v2003_v56 = vld [vmem:[%s2579_s11 + $0x178] sm:$0xf0]  ;;  %v2002_v3 = vor.u32 %v2281_v49, %v2001_v47  ;;  %v986_v8 = vpop.f32.mrf.mxu0 }
 0x104   : > { %v2006_v5 = vor.u32 %v2279_v55, %v2003_v56 }
 0x105   : > { %v1423_v24 = vadd.f32 %v2821_v25, %v1244_v6 }
 0x107   : > { %v1156_v13 = vpop.f32.mrf.mxu2  ;;  %v1455_v30 = vmax.f32 %v1423_v24, 0.0  ;;  %v2282_v24 = vld [vmem:[%s2579_s11 + $0x184] sm:$0xf] }
 0x108   : > { %v1157_v15 = vadd.f32 %v1156_v13, %v1068_v7 }
 0x109   : > { %v1070_v22 = vpop.f32.mrf.mxu1 }
 0x10a   : > { %v1245_v20 = vpop.f32.mrf.mxu3  ;;  %v1071_v32 = vadd.f32 %v1070_v22, %v981_v12 }
 0x10b   : > { %v1246_v26 = vadd.f32 %v1245_v20, %v1157_v15 }
 0x10c   : > { %1109 = vmatmul.bf16.gmra.mxu1 %v1982_v21  ;;  %1198 = vmatmul.bf16.gmra.mxu2 %v1986_v16 }
 0x10d   : > { %v1424_v29 = vadd.f32 %v2821_v25, %v1246_v26  ;;  %v988_v26 = vpop.f32.mrf.mxu0 }
 0x10f   : > { %1287 = vmatmul.bf16.gmra.mxu3 %v1990_v23  ;;  %v1456_v33 = vmax.f32 %v1424_v29, 0.0  ;;  %v1159_v37 = vpop.f32.mrf.mxu2  ;;  %v2011_v29 = vld [vmem:[%s2579_s11 + $0x190] sm:$0xf0] }
 0x110   : > { %v1160_v42 = vadd.f32 %v1159_v37, %v1071_v32  ;;  %v2285_v32 = vld [vmem:[%s2579_s11 + $0x194] sm:$0xf0]  ;;  %v2014_v43 = vor.u32 %v2282_v24, %v2011_v29 }
 0x111   : > { %v1486_v39 = vpack.c.bf16 %v1456_v33, %v1455_v30  ;;  %v1072_v41 = vpop.f32.mrf.mxu1  ;;  %v2017_v30 = vld [vmem:[%s2579_s11 + $0x188] sm:$0xf] }
 0x112   : > { %v1248_v38 = vpop.f32.mrf.mxu3  ;;  %v1073_v52 = vadd.f32 %v1072_v41, %v983_v40  ;;  %v2018_v46 = vor.u32 %v2285_v32, %v2017_v30 }
 0x113   : > { %1578 = vmatmul.bf16.gmra.mxu0 %v1486_v39  ;;  %v1249_v50 = vadd.f32 %v1248_v38, %v1160_v42  ;;  %v2283_v38 = vld [vmem:[%s2579_s11 + $0x18c] sm:$0xf]  ;;  %v2019_v39 = vld [vmem:[%s2579_s11 + $0x198] sm:$0xf0] }
 0x114   : > { %v2022_v49 = vor.u32 %v2283_v38, %v2019_v39 }
 0x115   : > { %v1425_v6 = vadd.f32 %v2821_v25, %v1249_v50 }
 0x117   : > { %v1161_v57 = vpop.f32.mrf.mxu2  ;;  %v1457_v12 = vmax.f32 %v1425_v6, 0.0  ;;  %v2286_v6 = vld [vmem:[%s2579_s11 + $0x1a4] sm:$0xf] }
 0x118   : > { %v1162_v58 = vadd.f32 %v1161_v57, %v1073_v52 }
 0x119   : > { %v1075_v4 = vpop.f32.mrf.mxu1 }
 0x11a   : > { %v1250_v59 = vpop.f32.mrf.mxu3  ;;  %v1076_v13 = vadd.f32 %v1075_v4, %v986_v8  ;;  %v2033_v8 = vld [vmem:[%s2579_s11 + $0x1a8] sm:$0xf] }
 0x11b   : > { %v1251_v7 = vadd.f32 %v1250_v59, %v1162_v58 }
 0x11c   : > { %1114 = vmatmul.bf16.gmra.mxu1 %v1998_v60  ;;  %1203 = vmatmul.bf16.gmra.mxu2 %v2002_v3 }
 0x11d   : > { %v1426_v9 = vadd.f32 %v2821_v25, %v1251_v7  ;;  %v2027_v7 = vld [vmem:[%s2579_s11 + $0x1b0] sm:$0xf0] }
 0x11f   : > { %1292 = vmatmul.bf16.gmra.mxu3 %v2006_v5  ;;  %v1458_v15 = vmax.f32 %v1426_v9, 0.0  ;;  %v1164_v20 = vpop.f32.mrf.mxu2  ;;  %v2289_v9 = vld [vmem:[%s2579_s11 + $0x1b4] sm:$0xf0] }
 0x120   : > { %v1165_v23 = vadd.f32 %v1164_v20, %v1076_v13  ;;  %v2035_v20 = vld [vmem:[%s2579_s11 + $0x1b8] sm:$0xf0]  ;;  %v2034_v24 = vor.u32 %v2289_v9, %v2033_v8 }
 0x121   : > { %v1487_v16 = vpack.c.bf16 %v1458_v15, %v1457_v12  ;;  %v1077_v22 = vpop.f32.mrf.mxu1  ;;  %v2287_v15 = vld [vmem:[%s2579_s11 + $0x1ac] sm:$0xf] }
 0x122   : > { %v1253_v21 = vpop.f32.mrf.mxu3  ;;  %v1078_v37 = vadd.f32 %v1077_v22, %v988_v26  ;;  %v2038_v26 = vor.u32 %v2287_v15, %v2035_v20 }
 0x123   : > { %1583 = vmatmul.bf16.gmra.mxu0 %v1487_v16  ;;  %v1254_v33 = vadd.f32 %v1253_v21, %v1165_v23  ;;  %v2030_v23 = vor.u32 %v2286_v6, %v2027_v7 }
 0x125   : > { %v1427_v50 = vadd.f32 %v2821_v25, %v1254_v33 }
 0x127   : > { %v1166_v40 = vpop.f32.mrf.mxu2  ;;  %v1459_v56 = vmax.f32 %v1427_v50, 0.0 }
 0x128   : > { %v1167_v41 = vadd.f32 %v1166_v40, %v1078_v37 }
 0x129   : > { %v1080_v47 = vpop.f32.mrf.mxu1 }
 0x12a   : > { %v1255_v42 = vpop.f32.mrf.mxu3  ;;  %v1081_v59 = vadd.f32 %v1080_v47, %v2721_v61  ;;  %v2049_v47 = vld [vmem:[%s2579_s11 + $0x1c8] sm:$0xf] }
 0x12b   : > { %v1256_v52 = vadd.f32 %v1255_v42, %v1167_v41 }
 0x12c   : > { %1119 = vmatmul.bf16.gmra.mxu1 %v2014_v43  ;;  %1208 = vmatmul.bf16.gmra.mxu2 %v2018_v46  ;;  %v2290_v43 = vld [vmem:[%s2579_s11 + $0x1c4] sm:$0xf]  ;;  %v2043_v46 = vld [vmem:[%s2579_s11 + $0x1d0] sm:$0xf0] }
 0x12d   : > { %v1428_v55 = vadd.f32 %v2821_v25, %v1256_v52 }
 0x12f   : > { %1297 = vmatmul.bf16.gmra.mxu3 %v2022_v49  ;;  %v1460_v57 = vmax.f32 %v1428_v55, 0.0  ;;  %v1169_v58 = vpop.f32.mrf.mxu2  ;;  %v2293_v49 = vld [vmem:[%s2579_s11 + $0x1d4] sm:$0xf0]  ;;  %v2291_v55 = vld [vmem:[%s2579_s11 + $0x1cc] sm:$0xf] }
 0x130   : > { %v1170_v5 = vadd.f32 %v1169_v58, %v1081_v59 }
 0x131   : > { %v1488_v3 = vpack.c.bf16 %v1460_v57, %v1459_v56  ;;  %v1082_v4 = vpop.f32.mrf.mxu1  ;;  %v2051_v56 = vld [vmem:[%s2579_s11 + $0x1d8] sm:$0xf0] }
 0x132   : > { %v1258_v60 = vpop.f32.mrf.mxu3  ;;  %v1083_v13 = vadd.f32 %v1082_v4, %v2730_v2  ;;  %v2054_v4 = vor.u32 %v2291_v55, %v2051_v56 }
 0x133   : > { %1588 = vmatmul.bf16.gmra.mxu0 %v1488_v3  ;;  %v1259_v12 = vadd.f32 %v1258_v60, %v1170_v5  ;;  %v2046_v60 = vor.u32 %v2290_v43, %v2043_v46  ;;  %v2050_v3 = vor.u32 %v2293_v49, %v2049_v47 }
 0x135   : > { %v1429_v29 = vadd.f32 %v2821_v25, %v1259_v12 }
 0x137   : > { %v1171_v21 = vpop.f32.mrf.mxu2  ;;  %v1461_v2 = vmax.f32 %v1429_v29, 0.0  ;;  %v2295_v29 = vld [vmem:[%s2579_s11 + $0x1ec] sm:$0xf] }
 0x138   : > { %v1172_v16 = vadd.f32 %v1171_v21, %v1083_v13 }
 0x139   : > { %v1085_v61 = vpop.f32.mrf.mxu1 }
 0x13a   : > { %v1260_v22 = vpop.f32.mrf.mxu3  ;;  %v1086_v38 = vadd.f32 %v1085_v61, %v2745_v14 }
 0x13b   : > { %v1261_v30 = vadd.f32 %v1260_v22, %v1172_v16  ;;  %v2294_v16 = vld [vmem:[%s2579_s11 + $0x1e4] sm:$0xf]  ;;  %v2059_v22 = vld [vmem:[%s2579_s11 + $0x1f0] sm:$0xf0] }
 0x13c   : > { %1124 = vmatmul.bf16.gmra.mxu1 %v2030_v23  ;;  %1213 = vmatmul.bf16.gmra.mxu2 %v2034_v24  ;;  %v2065_v23 = vld [vmem:[%s2579_s11 + $0x1e8] sm:$0xf]  ;;  %v2297_v24 = vld [vmem:[%s2579_s11 + $0x1f4] sm:$0xf0] }
 0x13d   : > { %v1430_v32 = vadd.f32 %v2821_v25, %v1261_v30  ;;  %v2067_v30 = vld [vmem:[%s2579_s11 + $0x1f8] sm:$0xf0]  ;;  %s1814_s11 = sshll.u32 %s2958_s25, 2 }
 0x13e   : > { %s2895_s22 = scalar_lea.vmem %s2952_s4, %s1814_s11 }
 0x13f   : > { %1302 = vmatmul.bf16.gmra.mxu3 %v2038_v26  ;;  %v1462_v33 = vmax.f32 %v1430_v32, 0.0  ;;  %v1174_v37 = vpop.f32.mrf.mxu2 }
 0x140   : > { %v1175_v42 = vadd.f32 %v1174_v37, %v1086_v38  ;;  %v2062_v37 = vor.u32 %v2294_v16, %v2059_v22  ;;  %v2066_v38 = vor.u32 %v2297_v24, %v2065_v23 }
 0x141   : > { %v1489_v40 = vpack.c.bf16 %v1462_v33, %v1461_v2  ;;  %v1087_v41 = vpop.f32.mrf.mxu1 }
 0x142   : > { %v1263_v39 = vpop.f32.mrf.mxu3  ;;  %v1088_v52 = vadd.f32 %v1087_v41, %v2754_v19 }
 0x143   : > { %1593 = vmatmul.bf16.gmra.mxu0 %v1489_v40  ;;  %v1264_v50 = vadd.f32 %v1263_v39, %v1175_v42  ;;  %v2070_v39 = vor.u32 %v2295_v29, %v2067_v30 }
 0x145   : > { %v1431_v5 = vadd.f32 %v2821_v25, %v1264_v50 }
 0x147   : > { %v1176_v57 = vpop.f32.mrf.mxu2  ;;  %v1463_v19 = vmax.f32 %v1431_v5, 0.0 }
 0x148   : > { %v1177_v58 = vadd.f32 %v1176_v57, %v1088_v52 }
 0x149   : > { %v1090_v14 = vpop.f32.mrf.mxu1 }
 0x14a   : > { %v1265_v59 = vpop.f32.mrf.mxu3  ;;  %v1091_v12 = vadd.f32 %v1090_v14, %v2769_v31 }
 0x14b   : > { %v1266_v6 = vadd.f32 %v1265_v59, %v1177_v58 }
 0x14c   : > { %1129 = vmatmul.bf16.gmra.mxu1 %v2046_v60  ;;  %1218 = vmatmul.bf16.gmra.mxu2 %v2050_v3 }
 0x14d   : > { %v1432_v7 = vadd.f32 %v2821_v25, %v1266_v6 }
 0x14f   : > { %1307 = vmatmul.bf16.gmra.mxu3 %v2054_v4  ;;  %v1464_v8 = vmax.f32 %v1432_v7, 0.0  ;;  %v1179_v9 = vpop.f32.mrf.mxu2 }
 0x150   : > { %v1180_v21 = vadd.f32 %v1179_v9, %v1091_v12 }
 0x151   : > { %v1490_v15 = vpack.c.bf16 %v1464_v8, %v1463_v19  ;;  %v1092_v20 = vpop.f32.mrf.mxu1 }
 0x152   : > { %v1268_v13 = vpop.f32.mrf.mxu3  ;;  %v1093_v26 = vadd.f32 %v1092_v20, %v2778_v36 }
 0x153   : > { %1598 = vmatmul.bf16.gmra.mxu0 %v1490_v15  ;;  %v1269_v61 = vadd.f32 %v1268_v13, %v1180_v21 }
 0x155   : > { %v1433_v40 = vadd.f32 %v2821_v25, %v1269_v61 }
 0x157   : > { %v1181_v32 = vpop.f32.mrf.mxu2  ;;  %v1465_v43 = vmax.f32 %v1433_v40, 0.0 }
 0x158   : > { %v1182_v2 = vadd.f32 %v1181_v32, %v1093_v26 }
 0x159   : > { %v1095_v31 = vpop.f32.mrf.mxu1 }
 0x15a   : > { %v1270_v33 = vpop.f32.mrf.mxu3  ;;  %v1096_v47 = vadd.f32 %v1095_v31, %v2793_v48 }
 0x15b   : > { %v1271_v41 = vadd.f32 %v1270_v33, %v1182_v2 }
 0x15c   : > { %1134 = vmatmul.bf16.gmra.mxu1 %v2062_v37  ;;  %1223 = vmatmul.bf16.gmra.mxu2 %v2066_v38 }
 0x15d   : > { %v1434_v42 = vadd.f32 %v2821_v25, %v1271_v41 }
 0x15f   : > { %1312 = vmatmul.bf16.gmra.mxu3 %v2070_v39  ;;  %v1466_v46 = vmax.f32 %v1434_v42, 0.0  ;;  %v1184_v36 = vpop.f32.mrf.mxu2 }
 0x160   : > { %v1185_v55 = vadd.f32 %v1184_v36, %v1096_v47 }
 0x161   : > { %v1491_v50 = vpack.c.bf16 %v1466_v46, %v1465_v43  ;;  %v1097_v52 = vpop.f32.mrf.mxu1 }
 0x162   : > { %v1273_v49 = vpop.f32.mrf.mxu3  ;;  %v1098_v57 = vadd.f32 %v1097_v52, %v2802_v54 }
 0x163   : > { %1603 = vmatmul.bf16.gmra.mxu0 %v1491_v50  ;;  %v1274_v56 = vadd.f32 %v1273_v49, %v1185_v55 }
 0x165   : > { %v1435_v14 = vadd.f32 %v2821_v25, %v1274_v56 }
 0x167   : > { %v1186_v58 = vpop.f32.mrf.mxu2  ;;  %v1467_v6 = vmax.f32 %v1435_v14, 0.0 }
 0x168   : > { %v1187_v59 = vadd.f32 %v1186_v58, %v1098_v57 }
 0x169   : > { %v1100_v3 = vpop.f32.mrf.mxu1 }
 0x16a   : > { %v1275_v60 = vpop.f32.mrf.mxu3  ;;  %v1101_v19 = vadd.f32 %v1100_v3, %v2726_v0 }
 0x16b   : > { %v1276_v4 = vadd.f32 %v1275_v60, %v1187_v59 }
 0x16d   : > { %v1436_v5 = vadd.f32 %v2821_v25, %v1276_v4 }
 0x16f   : > { %v1468_v7 = vmax.f32 %v1436_v5, 0.0  ;;  %v1189_v48 = vpop.f32.mrf.mxu2 }
 0x170   : > { %v1190_v13 = vadd.f32 %v1189_v48, %v1101_v19 }
 0x171   : > { %v1492_v9 = vpack.c.bf16 %v1468_v7, %v1467_v6  ;;  %v1102_v12 = vpop.f32.mrf.mxu1 }
 0x172   : > { %v1278_v8 = vpop.f32.mrf.mxu3  ;;  %v1103_v15 = vadd.f32 %v1102_v12, %v2741_v10 }
 0x173   : > { %1608 = vmatmul.bf16.gmra.mxu0 %v1492_v9  ;;  %v1279_v54 = vadd.f32 %v1278_v8, %v1190_v13 }
 0x175   : > { %v1437_v23 = vadd.f32 %v2821_v25, %v1279_v54 }
 0x177   : > { %v1191_v20 = vpop.f32.mrf.mxu2  ;;  %v1469_v26 = vmax.f32 %v1437_v23, 0.0 }
 0x178   : > { %v1192_v21 = vadd.f32 %v1191_v20, %v1103_v15 }
 0x179   : > { %v1105_v22 = vpop.f32.mrf.mxu1 }
 0x17a   : > { %v1280_v16 = vpop.f32.mrf.mxu3  ;;  %v1106_v32 = vadd.f32 %v1105_v22, %v2750_v17 }
 0x17b   : > { %v1281_v24 = vadd.f32 %v1280_v16, %v1192_v21 }
 0x17d   : > { %v1438_v61 = vadd.f32 %v2821_v25, %v1281_v24 }
 0x17f   : > { %v1470_v0 = vmax.f32 %v1438_v61, 0.0  ;;  %v1194_v29 = vpop.f32.mrf.mxu2 }
 0x180   : > { %v1574_v30 = vpop.f32.mrf.mxu0  ;;  %v1195_v10 = vadd.f32 %v1194_v29, %v1106_v32 }
 0x181   : > { %v1493_v33 = vpack.c.bf16 %v1470_v0, %v1469_v26  ;;  %v1107_v37 = vpop.f32.mrf.mxu1 }
 0x182   : > { %v1283_v2 = vpop.f32.mrf.mxu3  ;;  %v1108_v31 = vadd.f32 %v1107_v37, %v2765_v27 }
 0x183   : > { %1613 = vmatmul.bf16.gmra.mxu0 %v1493_v33  ;;  %v1284_v38 = vadd.f32 %v1283_v2, %v1195_v10 }
 0x185   : > { %v1439_v46 = vadd.f32 %v2821_v25, %v1284_v38 }
 0x187   : > { %v1196_v39 = vpop.f32.mrf.mxu2  ;;  %v1471_v49 = vmax.f32 %v1439_v46, 0.0 }
 0x188   : > { %v1576_v40 = vpop.f32.mrf.mxu0  ;;  %v1197_v41 = vadd.f32 %v1196_v39, %v1108_v31 }
 0x189   : > { %v2341_v17 = vpack.c.bf16 %v1576_v40, %v1574_v30  ;;  %v1110_v43 = vpop.f32.mrf.mxu1 }
 0x18a   : > { %v1285_v42 = vpop.f32.mrf.mxu3  ;;  %v1111_v55 = vadd.f32 %v1110_v43, %v2774_v34 }
 0x18b   : > { %v1286_v36 = vadd.f32 %v1285_v42, %v1197_v41  ;;  %2342 = vst [vmem:[%s2895_s22] sm:$0xff] %v2341_v17  }
 0x18d   : > { %v1440_v47 = vadd.f32 %v2821_v25, %v1286_v36 }
 0x18f   : > { %v1472_v27 = vmax.f32 %v1440_v47, 0.0  ;;  %v1199_v50 = vpop.f32.mrf.mxu2 }
 0x190   : > { %v1579_v52 = vpop.f32.mrf.mxu0  ;;  %v1200_v59 = vadd.f32 %v1199_v50, %v1111_v55 }
 0x191   : > { %v1494_v57 = vpack.c.bf16 %v1472_v27, %v1471_v49  ;;  %v1112_v58 = vpop.f32.mrf.mxu1 }
 0x192   : > { %v1288_v56 = vpop.f32.mrf.mxu3  ;;  %v1113_v3 = vadd.f32 %v1112_v58, %v2789_v44 }
 0x193   : > { %1618 = vmatmul.bf16.gmra.mxu0 %v1494_v57  ;;  %v1289_v60 = vadd.f32 %v1288_v56, %v1200_v59 }
 0x195   : > { %v1441_v19 = vadd.f32 %v2821_v25, %v1289_v60 }
 0x197   : > { %v1201_v14 = vpop.f32.mrf.mxu2  ;;  %v1473_v9 = vmax.f32 %v1441_v19, 0.0 }
 0x198   : > { %v1581_v4 = vpop.f32.mrf.mxu0  ;;  %v1202_v5 = vadd.f32 %v1201_v14, %v1113_v3 }
 0x199   : > { %v2346_v7 = vpack.c.bf16 %v1581_v4, %v1579_v52  ;;  %v1115_v48 = vpop.f32.mrf.mxu1 }
 0x19a   : > { %v1290_v6 = vpop.f32.mrf.mxu3  ;;  %v1116_v15 = vadd.f32 %v1115_v48, %v2798_v51 }
 0x19b   : > { %v1291_v8 = vadd.f32 %v1290_v6, %v1202_v5  ;;  %2418 = vst [vmem:[%s2895_s22 + $0x8] sm:$0xff] %v2346_v7  }
 0x19d   : > { %v1442_v34 = vadd.f32 %v2821_v25, %v1291_v8 }
 0x19f   : > { %v1474_v12 = vmax.f32 %v1442_v34, 0.0  ;;  %v1204_v13 = vpop.f32.mrf.mxu2 }
 0x1a0   : > { %v1584_v54 = vpop.f32.mrf.mxu0  ;;  %v1205_v16 = vadd.f32 %v1204_v13, %v1116_v15 }
 0x1a1   : > { %v1495_v20 = vpack.c.bf16 %v1474_v12, %v1473_v9  ;;  %v1117_v21 = vpop.f32.mrf.mxu1 }
 0x1a2   : > { %v1293_v44 = vpop.f32.mrf.mxu3  ;;  %v1118_v23 = vadd.f32 %v1117_v21, %v2810_v62 }
 0x1a3   : > { %1623 = vmatmul.bf16.gmra.mxu0 %v1495_v20  ;;  %v1294_v22 = vadd.f32 %v1293_v44, %v1205_v16 }
 0x1a5   : > { %v1443_v32 = vadd.f32 %v2821_v25, %v1294_v22 }
 0x1a7   : > { %v1206_v24 = vpop.f32.mrf.mxu2  ;;  %v1475_v33 = vmax.f32 %v1443_v32, 0.0 }
 0x1a8   : > { %v1586_v61 = vpop.f32.mrf.mxu0  ;;  %v1207_v26 = vadd.f32 %v1206_v24, %v1118_v23 }
 0x1a9   : > { %v2351_v29 = vpack.c.bf16 %v1586_v61, %v1584_v54  ;;  %v1120_v30 = vpop.f32.mrf.mxu1 }
 0x1aa   : > { %v1295_v0 = vpop.f32.mrf.mxu3  ;;  %v1121_v31 = vadd.f32 %v1120_v30, %v2728_v1 }
 0x1ab   : > { %v1296_v2 = vadd.f32 %v1295_v0, %v1207_v26  ;;  %2419 = vst [vmem:[%s2895_s22 + $0x10] sm:$0xff] %v2351_v29  }
 0x1ad   : > { %v1444_v51 = vadd.f32 %v2821_v25, %v1296_v2 }
 0x1af   : > { %v1476_v37 = vmax.f32 %v1444_v51, 0.0  ;;  %v1209_v10 = vpop.f32.mrf.mxu2 }
 0x1b0   : > { %v1589_v38 = vpop.f32.mrf.mxu0  ;;  %v1210_v41 = vadd.f32 %v1209_v10, %v1121_v31 }
 0x1b1   : > { %v1496_v39 = vpack.c.bf16 %v1476_v37, %v1475_v33  ;;  %v1122_v40 = vpop.f32.mrf.mxu1 }
 0x1b2   : > { %v1298_v62 = vpop.f32.mrf.mxu3  ;;  %v1123_v17 = vadd.f32 %v1122_v40, %v2743_v11 }
 0x1b3   : > { %1628 = vmatmul.bf16.gmra.mxu0 %v1496_v39  ;;  %v1299_v42 = vadd.f32 %v1298_v62, %v1210_v41 }
 0x1b5   : > { %v1445_v50 = vadd.f32 %v2821_v25, %v1299_v42 }
 0x1b7   : > { %v1211_v43 = vpop.f32.mrf.mxu2  ;;  %v1477_v55 = vmax.f32 %v1445_v50, 0.0 }
 0x1b8   : > { %v1591_v46 = vpop.f32.mrf.mxu0  ;;  %v1212_v36 = vadd.f32 %v1211_v43, %v1123_v17 }
 0x1b9   : > { %v2356_v49 = vpack.c.bf16 %v1591_v46, %v1589_v38  ;;  %v1125_v27 = vpop.f32.mrf.mxu1 }
 0x1ba   : > { %v1300_v47 = vpop.f32.mrf.mxu3  ;;  %v1126_v59 = vadd.f32 %v1125_v27, %v2752_v18 }
 0x1bb   : > { %v1301_v52 = vadd.f32 %v1300_v47, %v1212_v36  ;;  %2420 = vst [vmem:[%s2895_s22 + $0x18] sm:$0xff] %v2356_v49  }
 0x1bd   : > { %v1446_v1 = vadd.f32 %v2821_v25, %v1301_v52 }
 0x1bf   : > { %v1478_v56 = vmax.f32 %v1446_v1, 0.0  ;;  %v1214_v57 = vpop.f32.mrf.mxu2 }
 0x1c0   : > { %v1594_v58 = vpop.f32.mrf.mxu0  ;;  %v1215_v14 = vadd.f32 %v1214_v57, %v1126_v59 }
 0x1c1   : > { %v1497_v60 = vpack.c.bf16 %v1478_v56, %v1477_v55  ;;  %v1127_v3 = vpop.f32.mrf.mxu1 }
 0x1c2   : > { %v1303_v11 = vpop.f32.mrf.mxu3  ;;  %v1128_v5 = vadd.f32 %v1127_v3, %v2767_v28 }
 0x1c3   : > { %1633 = vmatmul.bf16.gmra.mxu0 %v1497_v60  ;;  %v1304_v4 = vadd.f32 %v1303_v11, %v1215_v14 }
 0x1c5   : > { %v1447_v9 = vadd.f32 %v2821_v25, %v1304_v4 }
 0x1c7   : > { %v1216_v6 = vpop.f32.mrf.mxu2  ;;  %v1479_v13 = vmax.f32 %v1447_v9, 0.0 }
 0x1c8   : > { %v1596_v7 = vpop.f32.mrf.mxu0  ;;  %v1217_v48 = vadd.f32 %v1216_v6, %v1128_v5 }
 0x1c9   : > { %v2361_v8 = vpack.c.bf16 %v1596_v7, %v1594_v58  ;;  %v1130_v34 = vpop.f32.mrf.mxu1 }
 0x1ca   : > { %v1305_v19 = vpop.f32.mrf.mxu3  ;;  %v1131_v20 = vadd.f32 %v1130_v34, %v2776_v35 }
 0x1cb   : > { %v1306_v12 = vadd.f32 %v1305_v19, %v1217_v48  ;;  %2421 = vst [vmem:[%s2895_s22 + $0x20] sm:$0xff] %v2361_v8  }
 0x1cd   : > { %v1448_v18 = vadd.f32 %v2821_v25, %v1306_v12 }
 0x1cf   : > { %v1480_v54 = vmax.f32 %v1448_v18, 0.0  ;;  %v1219_v15 = vpop.f32.mrf.mxu2 }
 0x1d0   : > { %v1599_v44 = vpop.f32.mrf.mxu0  ;;  %v1220_v22 = vadd.f32 %v1219_v15, %v1131_v20 }
 0x1d1   : > { %v1498_v21 = vpack.c.bf16 %v1480_v54, %v1479_v13  ;;  %v1132_v16 = vpop.f32.mrf.mxu1 }
 0x1d2   : > { %v1308_v28 = vpop.f32.mrf.mxu3  ;;  %v1133_v24 = vadd.f32 %v1132_v16, %v2791_v45 }
 0x1d3   : > { %1638 = vmatmul.bf16.gmra.mxu0 %v1498_v21  ;;  %v1309_v23 = vadd.f32 %v1308_v28, %v1220_v22 }
 0x1d5   : > { %v1449_v2 = vadd.f32 %v2821_v25, %v1309_v23 }
 0x1d7   : > { %v1221_v61 = vpop.f32.mrf.mxu2  ;;  %v1481_v33 = vmax.f32 %v1449_v2, 0.0 }
 0x1d8   : > { %v1601_v26 = vpop.f32.mrf.mxu0  ;;  %v1222_v0 = vadd.f32 %v1221_v61, %v1133_v24 }
 0x1d9   : > { %v2366_v30 = vpack.c.bf16 %v1601_v26, %v1599_v44  ;;  %v1135_v32 = vpop.f32.mrf.mxu1 }
 0x1da   : > { %v1310_v29 = vpop.f32.mrf.mxu3  ;;  %v1136_v31 = vadd.f32 %v1135_v32, %v2800_v53 }
 0x1db   : > { %v1311_v51 = vadd.f32 %v1310_v29, %v1222_v0  ;;  %2422 = vst [vmem:[%s2895_s22 + $0x28] sm:$0xff] %v2366_v30  }
 0x1dd   : > { %v1450_v35 = vadd.f32 %v2821_v25, %v1311_v51 }
 0x1df   : > { %v1482_v37 = vmax.f32 %v1450_v35, 0.0  ;;  %v1224_v10 = vpop.f32.mrf.mxu2 }
 0x1e0   : > { %v1604_v38 = vpop.f32.mrf.mxu0  ;;  %v1225_v39 = vadd.f32 %v1224_v10, %v1136_v31 }
 0x1e1   : > { %v1499_v62 = vpack.c.bf16 %v1482_v37, %v1481_v33  ;;  %v1137_v40 = vpop.f32.mrf.mxu1 }
 0x1e2   : > { %v1313_v45 = vpop.f32.mrf.mxu3  ;;  %v1138_v42 = vadd.f32 %v1137_v40, %v2812_v63 }
 0x1e3   : > { %1643 = vmatmul.bf16.gmra.mxu0 %v1499_v62  ;;  %v1314_v41 = vadd.f32 %v1313_v45, %v1225_v39 }
 0x1e5   : > { %v1451_v49 = vadd.f32 %v2821_v25, %v1314_v41 }
 0x1e7   : > { %v1226_v17 = vpop.f32.mrf.mxu2  ;;  %v1483_v50 = vmax.f32 %v1451_v49, 0.0 }
 0x1e8   : > { %v1606_v43 = vpop.f32.mrf.mxu0  ;;  %v1227_v46 = vadd.f32 %v1226_v17, %v1138_v42 }
 0x1e9   : > { %v2371_v36 = vpack.c.bf16 %v1606_v43, %v1604_v38 }
 0x1ea   : > { %v1315_v47 = vpop.f32.mrf.mxu3 }
 0x1eb   : > { %v1316_v27 = vadd.f32 %v1315_v47, %v1227_v46  ;;  %2423 = vst [vmem:[%s2895_s22 + $0x30] sm:$0xff] %v2371_v36  }
 0x1ed   : > { %v1452_v53 = vadd.f32 %v2821_v25, %v1316_v27 }
 0x1ef   : > { %v1484_v52 = vmax.f32 %v1452_v53, 0.0 }
 0x1f0   : > { %v1609_v1 = vpop.f32.mrf.mxu0 }
 0x1f1   : > { %v1500_v55 = vpack.c.bf16 %v1484_v52, %v1483_v50 }
 0x1f3   : > { %1648 = vmatmul.bf16.gmra.mxu0 %v1500_v55 }
 0x1f8   : > { %v1611_v63 = vpop.f32.mrf.mxu0 }
 0x1f9   : > { %v2376_v56 = vpack.c.bf16 %v1611_v63, %v1609_v1 }
 0x1fb   : > { %2424 = vst [vmem:[%s2895_s22 + $0x38] sm:$0xff] %v2376_v56  }
 0x200   : > { %v1614_v57 = vpop.f32.mrf.mxu0 }
 0x208   : > { %v1616_v58 = vpop.f32.mrf.mxu0 }
 0x209   : > { %v2381_v59 = vpack.c.bf16 %v1616_v58, %v1614_v57 }
 0x20b   : > { %2425 = vst [vmem:[%s2895_s22 + $0x40] sm:$0xff] %v2381_v59  }
 0x210   : > { %v1619_v11 = vpop.f32.mrf.mxu0 }
 0x218   : > { %v1621_v60 = vpop.f32.mrf.mxu0 }
 0x219   : > { %v2386_v3 = vpack.c.bf16 %v1621_v60, %v1619_v11 }
 0x21b   : > { %2426 = vst [vmem:[%s2895_s22 + $0x48] sm:$0xff] %v2386_v3  }
 0x220   : > { %v1624_v25 = vpop.f32.mrf.mxu0 }
 0x228   : > { %v1626_v14 = vpop.f32.mrf.mxu0 }
 0x229   : > { %v2391_v4 = vpack.c.bf16 %v1626_v14, %v1624_v25 }
 0x22b   : > { %2427 = vst [vmem:[%s2895_s22 + $0x50] sm:$0xff] %v2391_v4  }
 0x230   : > { %v1629_v5 = vpop.f32.mrf.mxu0 }
 0x238   : > { %v1631_v6 = vpop.f32.mrf.mxu0 }
 0x239   : > { %v2396_v7 = vpack.c.bf16 %v1631_v6, %v1629_v5 }
 0x23b   : > { %2428 = vst [vmem:[%s2895_s22 + $0x58] sm:$0xff] %v2396_v7  }
 0x240   : > { %v1634_v48 = vpop.f32.mrf.mxu0 }
 0x248   : > { %v1636_v19 = vpop.f32.mrf.mxu0 }
 0x249   : > { %v2401_v8 = vpack.c.bf16 %v1636_v19, %v1634_v48 }
 0x24b   : > { %2429 = vst [vmem:[%s2895_s22 + $0x60] sm:$0xff] %v2401_v8  }
 0x250   : > { %v1639_v34 = vpop.f32.mrf.mxu0 }
 0x258   : > { %v1641_v9 = vpop.f32.mrf.mxu0 }
 0x259   : > { %v2406_v12 = vpack.c.bf16 %v1641_v9, %v1639_v34 }
 0x25b   : > { %2430 = vst [vmem:[%s2895_s22 + $0x68] sm:$0xff] %v2406_v12  }
 0x260   : > { %v1644_v18 = vpop.f32.mrf.mxu0 }
 0x268   : > { %v1646_v13 = vpop.f32.mrf.mxu0 }
 0x269   : > { %v2411_v54 = vpack.c.bf16 %v1646_v13, %v1644_v18 }
 0x26b   : > { %2431 = vst [vmem:[%s2895_s22 + $0x70] sm:$0xff] %v2411_v54  }
 0x270   : > { %v1649_v15 = vpop.f32.mrf.mxu0 }
 0x278   : > { %v1651_v44 = vpop.f32.mrf.mxu0 }
 0x279   : > { %v2416_v20 = vpack.c.bf16 %v1651_v44, %v1649_v15 }
 0x27b   : > { %2432 = vst [vmem:[%s2895_s22 + $0x78] sm:$0xff] %v2416_v20  }
 0x27c PF: > { %s14_s17 = sadd.s32 1, %s2504_s17   ;;  %s2953_s15 = smov %s2500_s16 }
 0x27d   : > { %p11_p5 = scmp.ge.s32.totalorder %s14_s17, 4   ;;  %s2954_s16 = smov %s2956_s18 }
 0x27f   :  { %13 = sbr.rel (!%p11_p5) target bundleno = 2 (0x2), region = 77 }

</bundles_post_ra>
